<compile_context>
chip_gen: v5e
topology: v5e:2x2
jax: 0.10.0
libtpu: 0.0.40
codegen_flags: <defaults>
</compile_context>

<pallas_src>
import jax
import jax.numpy as jnp
from jax import lax
from jax.experimental import pallas as pl
from jax.experimental.pallas import tpu as pltpu

RK4_SUBSTEPS = 8  # fixed substeps per output time interval


def _make_ode_block_kernel(use_bf16_mxu):
    mxu_dtype = jnp.bfloat16 if use_bf16_mxu else jnp.float32

    def kernel(t_ref, z0_ref, w1_ref, b1_ref, w2_ref, b2_ref, out_ref):
        Bb, H = z0_ref.shape            # batch-block rows feed the MXU M dim
        T = out_ref.shape[0]

        # Hoisted out of all loops: MXU-dtype weight casts and bias broadcasts.
        w1 = w1_ref[...].astype(mxu_dtype)
        w2 = w2_ref[...].astype(mxu_dtype)
        b1 = jnp.broadcast_to(b1_ref[...], (Bb, H))
        b2 = jnp.broadcast_to(b2_ref[...], (Bb, H))

        def softplus(a):
            # numerically stable softplus in f32 (matches torch.nn.Softplus, beta=1)
            return jnp.maximum(a, 0.0) + jnp.log1p(jnp.exp(-jnp.abs(a)))

        def ode_func(h):
            # MXU-dtype operands at the dot boundary, f32 accumulation/elementwise.
            a = jnp.dot(h.astype(mxu_dtype), w1,
                        preferred_element_type=jnp.float32) + b1
            s = softplus(a)
            return jnp.dot(s.astype(mxu_dtype), w2,
                           preferred_element_type=jnp.float32) + b2

        z0 = z0_ref[...].astype(jnp.float32)
        # trajectory at t[0] is exactly the initial state (odeint semantics)
        out_ref[pl.ds(0, 1)] = z0[None].astype(out_ref.dtype)

        def time_step(i, carry):
            z, t_prev = carry
            t_i = t_ref[i]                       # single SMEM scalar read / interval
            dt = (t_i - t_prev) / RK4_SUBSTEPS

            # Interval-constant scalars and their vector splats, hoisted out of
            # the 8 unrolled substeps (broadcast_in_dim is not CSE'd by JAX).
            half_dt_v = jnp.full((Bb, H), 0.5 * dt, jnp.float32)
            dt_v = jnp.full((Bb, H), dt, jnp.float32)
            dt6_v = jnp.full((Bb, H), dt / 6.0, jnp.float32)

            def rk4_step(_, h):
                k1 = ode_func(h)
                k2 = ode_func(h + half_dt_v * k1)
                k3 = ode_func(h + half_dt_v * k2)
                k4 = ode_func(h + dt_v * k3)
                return h + dt6_v * (k1 + 2.0 * (k2 + k3) + k4)

            # short fixed trip count -> unroll for LLO scheduler visibility
            z = lax.fori_loop(0, RK4_SUBSTEPS, rk4_step, z, unroll=True)
            out_ref[pl.ds(i, 1)] = z[None].astype(out_ref.dtype)
            return (z, t_i)

        lax.fori_loop(1, T, time_step, (z0, t_ref[0]))

    return kernel


def ode_block(z0, t, w1, b1, w2, b2, *, use_bf16_mxu=True):
    """z0: (B, H) f32; t: (T,) f32; weights pre-transposed to (in, out).

    Returns the trajectory (T, B, H) f32.
    """
    B, H = z0.shape
    T = t.shape[0]

    # Batch tile: whole batch per grid step for small B; for large batches
    # (multiple of 128) tile at 128 rows and expose a "parallel" grid axis so
    # v7x's two TensorCores each take a share.
    bm = 128 if (B > 128 and B % 128 == 0) else B
    grid = (B // bm,)

    # Advisory cost estimate for XLA's scheduler.
    n_evals = 4 * RK4_SUBSTEPS * (T - 1)                 # ode_func evaluations
    flops = 2 * 2 * B * H * H * n_evals                  # 2 dots, 2 flops/MAC
    transcendentals = 2 * B * H * n_evals                # exp + log1p per element
    bytes_accessed = 4 * (B * H + T + 2 * H * H + 2 * H + T * B * H)

    return pl.pallas_call(
        _make_ode_block_kernel(use_bf16_mxu),
        out_shape=jax.ShapeDtypeStruct((T, B, H), jnp.float32),
        grid=grid,
        in_specs=[
            pl.BlockSpec(memory_space=pltpu.MemorySpace.SMEM),  # t (scalar table)
            pl.BlockSpec((bm, H), lambda i: (i, 0)),            # z0 batch block
            pl.BlockSpec((H, H), lambda i: (0, 0)),             # w1 (in, out)
            pl.BlockSpec((1, H), lambda i: (0, 0)),             # b1
            pl.BlockSpec((H, H), lambda i: (0, 0)),             # w2 (in, out)
            pl.BlockSpec((1, H), lambda i: (0, 0)),             # b2
        ],
        out_specs=pl.BlockSpec((T, bm, H), lambda i: (0, i, 0)),
        compiler_params=pltpu.CompilerParams(
            dimension_semantics=("parallel",)),
        cost_estimate=pl.CostEstimate(
            flops=flops,
            transcendentals=transcendentals,
            bytes_accessed=bytes_accessed),
    )(t, z0, w1, b1, w2, b2)


def init_params(key, hidden_dim):
    """Deterministic PyTorch-Linear-style init: U(-1/sqrt(H), 1/sqrt(H))."""
    k1, k2, k3, k4 = jax.random.split(key, 4)
    bound = 1.0 / jnp.sqrt(hidden_dim)
    w1 = jax.random.uniform(k1, (hidden_dim, hidden_dim), jnp.float32, -bound, bound)
    b1 = jax.random.uniform(k2, (1, hidden_dim), jnp.float32, -bound, bound)
    w2 = jax.random.uniform(k3, (hidden_dim, hidden_dim), jnp.float32, -bound, bound)
    b2 = jax.random.uniform(k4, (1, hidden_dim), jnp.float32, -bound, bound)
    return w1, b1, w2, b2


if __name__ == "__main__":
    key = jax.random.PRNGKey(0)
    k_params, k_z0 = jax.random.split(key)

    batch = 8
    hidden_dim = 32
    n_times = 8

    w1, b1, w2, b2 = init_params(k_params, hidden_dim)
    z0 = jax.random.normal(k_z0, (batch, hidden_dim), jnp.float32)
    t = jnp.linspace(0.0, 1.0, n_times, dtype=jnp.float32)

    traj = ode_block(z0, t, w1, b1, w2, b2)
    traj = jax.block_until_ready(traj)

    assert traj.shape == (n_times, batch, hidden_dim)
    assert bool(jnp.all(jnp.isfinite(traj)))
    # trajectory at t[0] must equal the initial state exactly
    assert bool(jnp.allclose(traj[0], z0, atol=0.0))

    print("KERNEL_OK")
</pallas_src>

<mosaic_0001>
module attributes {stable_mosaic.version = 11 : i64} {
  func.func @kernel(%arg0: i32, %arg1: memref<8xf32, #tpu.memory_space<smem>>, %arg2: memref<8x32xf32, #tpu.memory_space<vmem>>, %arg3: memref<32x32xf32, #tpu.memory_space<vmem>>, %arg4: memref<1x32xf32, #tpu.memory_space<vmem>>, %arg5: memref<32x32xf32, #tpu.memory_space<vmem>>, %arg6: memref<1x32xf32, #tpu.memory_space<vmem>>, %arg7: memref<8x8x32xf32, #tpu.memory_space<vmem>>) attributes {dimension_semantics = [#tpu.dimension_semantics<parallel>], iteration_bounds = array<i64: 1>, scalar_prefetch = 0 : i64, scratch_operands = 0 : i64, tpu.core_type = #tpu.core_type<tc>, window_params = [{transform_indices = @transform_0, window_bounds = array<i64: 8>}, {transform_indices = @transform_1, window_bounds = array<i64: 8, 32>}, {pipeline_mode = #tpu.pipeline_mode<synchronous>, transform_indices = @transform_2, window_bounds = array<i64: 32, 32>}, {pipeline_mode = #tpu.pipeline_mode<synchronous>, transform_indices = @transform_3, window_bounds = array<i64: 1, 32>}, {pipeline_mode = #tpu.pipeline_mode<synchronous>, transform_indices = @transform_4, window_bounds = array<i64: 32, 32>}, {pipeline_mode = #tpu.pipeline_mode<synchronous>, transform_indices = @transform_5, window_bounds = array<i64: 1, 32>}, {transform_indices = @transform_6, window_bounds = array<i64: 8, 8, 32>}]} {
    %c0 = arith.constant 0 : index
    %c0_0 = arith.constant 0 : index
    %0 = vector.load %arg3[%c0, %c0_0] : memref<32x32xf32, #tpu.memory_space<vmem>>, vector<32x32xf32>
    %1 = arith.truncf %0 : vector<32x32xf32> to vector<32x32xbf16>
    %c0_1 = arith.constant 0 : index
    %c0_2 = arith.constant 0 : index
    %2 = vector.load %arg5[%c0_1, %c0_2] : memref<32x32xf32, #tpu.memory_space<vmem>>, vector<32x32xf32>
    %3 = arith.truncf %2 : vector<32x32xf32> to vector<32x32xbf16>
    %c0_3 = arith.constant 0 : index
    %c0_4 = arith.constant 0 : index
    %4 = vector.load %arg4[%c0_3, %c0_4] : memref<1x32xf32, #tpu.memory_space<vmem>>, vector<1x32xf32>
    %5 = vector.shape_cast %4 : vector<1x32xf32> to vector<1x32xf32>
    %6 = vector.broadcast %5 : vector<1x32xf32> to vector<8x32xf32>
    %c0_5 = arith.constant 0 : index
    %c0_6 = arith.constant 0 : index
    %7 = vector.load %arg6[%c0_5, %c0_6] : memref<1x32xf32, #tpu.memory_space<vmem>>, vector<1x32xf32>
    %8 = vector.shape_cast %7 : vector<1x32xf32> to vector<1x32xf32>
    %9 = vector.broadcast %8 : vector<1x32xf32> to vector<8x32xf32>
    %c0_7 = arith.constant 0 : index
    %c0_8 = arith.constant 0 : index
    %10 = vector.load %arg2[%c0_7, %c0_8] : memref<8x32xf32, #tpu.memory_space<vmem>>, vector<8x32xf32>
    %11 = vector.shape_cast %10 : vector<8x32xf32> to vector<1x8x32xf32>
    %c0_9 = arith.constant 0 : index
    %c0_10 = arith.constant 0 : index
    %c0_11 = arith.constant 0 : index
    %12 = vector.load %arg7[%c0_9, %c0_10, %c0_11] : memref<8x8x32xf32, #tpu.memory_space<vmem>>, vector<1x8x32xf32>
    tpu.vector_store %arg7[%c0_9, %c0_10, %c0_11], %11 {strides = array<i32>} : memref<8x8x32xf32, #tpu.memory_space<vmem>>, vector<1x8x32xf32>,
    %c0_12 = arith.constant 0 : index
    %13 = memref.load %arg1[%c0_12] : memref<8xf32, #tpu.memory_space<smem>>
    %c1_i32 = arith.constant 1 : i32
    %c7_i32 = arith.constant 7 : i32
    %14 = arith.addi %c1_i32, %c7_i32 : i32
    %c1_i32_13 = arith.constant 1 : i32
    %15:2 = scf.for %arg8 = %c1_i32 to %14 step %c1_i32_13 iter_args(%arg9 = %10, %arg10 = %13) -> (vector<8x32xf32>, f32)  : i32 {
      %16 = arith.index_cast %arg8 : i32 to index
      %17 = memref.load %arg1[%16] : memref<8xf32, #tpu.memory_space<smem>>
      %18 = arith.subf %17, %arg10 : f32
      %cst = arith.constant 8.000000e+00 : f32
      %19 = arith.divf %18, %cst : f32
      %cst_15 = arith.constant 5.000000e-01 : f32
      %20 = arith.mulf %cst_15, %19 : f32
      %21 = vector.broadcast %20 : f32 to vector<8x32xf32>
      %22 = vector.broadcast %19 : f32 to vector<8x32xf32>
      %cst_16 = arith.constant 6.000000e+00 : f32
      %23 = arith.divf %19, %cst_16 : f32
      %24 = vector.broadcast %23 : f32 to vector<8x32xf32>
      %c0_i32 = arith.constant 0 : i32
      %25 = arith.truncf %arg9 : vector<8x32xf32> to vector<8x32xbf16>
      %cst_17 = arith.constant dense<0.000000e+00> : vector<8x32xf32>
      %26 = tpu.matmul %25, %1, %cst_17 {dimension_numbers = #tpu.dot_dimension_numbers<[1], [0], [0], [1], [0, 0, 1, 1], [], []>} : vector<8x32xbf16>, vector<32x32xbf16>, vector<8x32xf32> -> vector<8x32xf32>
      %27 = arith.addf %26, %6 : vector<8x32xf32>
      %cst_18 = arith.constant 0.000000e+00 : f32
      %28 = vector.broadcast %cst_18 : f32 to vector<8x32xf32>
      %29 = arith.maximumf %27, %28 : vector<8x32xf32>
      %30 = math.absf %27 : vector<8x32xf32>
      %cst_19 = arith.constant 0.000000e+00 : f32
      %31 = vector.broadcast %cst_19 : f32 to vector<8x32xf32>
      %32 = arith.subf %31, %30 : vector<8x32xf32>
      %33 = math.exp %32 : vector<8x32xf32>
      %34 = math.log1p %33 : vector<8x32xf32>
      %35 = arith.addf %29, %34 : vector<8x32xf32>
      %36 = arith.truncf %35 : vector<8x32xf32> to vector<8x32xbf16>
      %cst_20 = arith.constant dense<0.000000e+00> : vector<8x32xf32>
      %37 = tpu.matmul %36, %3, %cst_20 {dimension_numbers = #tpu.dot_dimension_numbers<[1], [0], [0], [1], [0, 0, 1, 1], [], []>} : vector<8x32xbf16>, vector<32x32xbf16>, vector<8x32xf32> -> vector<8x32xf32>
      %38 = arith.addf %37, %9 : vector<8x32xf32>
      %39 = arith.mulf %21, %38 : vector<8x32xf32>
      %40 = arith.addf %arg9, %39 : vector<8x32xf32>
      %41 = arith.truncf %40 : vector<8x32xf32> to vector<8x32xbf16>
      %cst_21 = arith.constant dense<0.000000e+00> : vector<8x32xf32>
      %42 = tpu.matmul %41, %1, %cst_21 {dimension_numbers = #tpu.dot_dimension_numbers<[1], [0], [0], [1], [0, 0, 1, 1], [], []>} : vector<8x32xbf16>, vector<32x32xbf16>, vector<8x32xf32> -> vector<8x32xf32>
      %43 = arith.addf %42, %6 : vector<8x32xf32>
      %cst_22 = arith.constant 0.000000e+00 : f32
      %44 = vector.broadcast %cst_22 : f32 to vector<8x32xf32>
      %45 = arith.maximumf %43, %44 : vector<8x32xf32>
      %46 = math.absf %43 : vector<8x32xf32>
      %cst_23 = arith.constant 0.000000e+00 : f32
      %47 = vector.broadcast %cst_23 : f32 to vector<8x32xf32>
      %48 = arith.subf %47, %46 : vector<8x32xf32>
      %49 = math.exp %48 : vector<8x32xf32>
      %50 = math.log1p %49 : vector<8x32xf32>
      %51 = arith.addf %45, %50 : vector<8x32xf32>
      %52 = arith.truncf %51 : vector<8x32xf32> to vector<8x32xbf16>
      %cst_24 = arith.constant dense<0.000000e+00> : vector<8x32xf32>
      %53 = tpu.matmul %52, %3, %cst_24 {dimension_numbers = #tpu.dot_dimension_numbers<[1], [0], [0], [1], [0, 0, 1, 1], [], []>} : vector<8x32xbf16>, vector<32x32xbf16>, vector<8x32xf32> -> vector<8x32xf32>
      %54 = arith.addf %53, %9 : vector<8x32xf32>
      %55 = arith.mulf %21, %54 : vector<8x32xf32>
      %56 = arith.addf %arg9, %55 : vector<8x32xf32>
      %57 = arith.truncf %56 : vector<8x32xf32> to vector<8x32xbf16>
      %cst_25 = arith.constant dense<0.000000e+00> : vector<8x32xf32>
      %58 = tpu.matmul %57, %1, %cst_25 {dimension_numbers = #tpu.dot_dimension_numbers<[1], [0], [0], [1], [0, 0, 1, 1], [], []>} : vector<8x32xbf16>, vector<32x32xbf16>, vector<8x32xf32> -> vector<8x32xf32>
      %59 = arith.addf %58, %6 : vector<8x32xf32>
      %cst_26 = arith.constant 0.000000e+00 : f32
      %60 = vector.broadcast %cst_26 : f32 to vector<8x32xf32>
      %61 = arith.maximumf %59, %60 : vector<8x32xf32>
      %62 = math.absf %59 : vector<8x32xf32>
      %cst_27 = arith.constant 0.000000e+00 : f32
      %63 = vector.broadcast %cst_27 : f32 to vector<8x32xf32>
      %64 = arith.subf %63, %62 : vector<8x32xf32>
      %65 = math.exp %64 : vector<8x32xf32>
      %66 = math.log1p %65 : vector<8x32xf32>
      %67 = arith.addf %61, %66 : vector<8x32xf32>
      %68 = arith.truncf %67 : vector<8x32xf32> to vector<8x32xbf16>
      %cst_28 = arith.constant dense<0.000000e+00> : vector<8x32xf32>
      %69 = tpu.matmul %68, %3, %cst_28 {dimension_numbers = #tpu.dot_dimension_numbers<[1], [0], [0], [1], [0, 0, 1, 1], [], []>} : vector<8x32xbf16>, vector<32x32xbf16>, vector<8x32xf32> -> vector<8x32xf32>
      %70 = arith.addf %69, %9 : vector<8x32xf32>
      %71 = arith.mulf %22, %70 : vector<8x32xf32>
      %72 = arith.addf %arg9, %71 : vector<8x32xf32>
      %73 = arith.truncf %72 : vector<8x32xf32> to vector<8x32xbf16>
      %cst_29 = arith.constant dense<0.000000e+00> : vector<8x32xf32>
      %74 = tpu.matmul %73, %1, %cst_29 {dimension_numbers = #tpu.dot_dimension_numbers<[1], [0], [0], [1], [0, 0, 1, 1], [], []>} : vector<8x32xbf16>, vector<32x32xbf16>, vector<8x32xf32> -> vector<8x32xf32>
      %75 = arith.addf %74, %6 : vector<8x32xf32>
      %cst_30 = arith.constant 0.000000e+00 : f32
      %76 = vector.broadcast %cst_30 : f32 to vector<8x32xf32>
      %77 = arith.maximumf %75, %76 : vector<8x32xf32>
      %78 = math.absf %75 : vector<8x32xf32>
      %cst_31 = arith.constant 0.000000e+00 : f32
      %79 = vector.broadcast %cst_31 : f32 to vector<8x32xf32>
      %80 = arith.subf %79, %78 : vector<8x32xf32>
      %81 = math.exp %80 : vector<8x32xf32>
      %82 = math.log1p %81 : vector<8x32xf32>
      %83 = arith.addf %77, %82 : vector<8x32xf32>
      %84 = arith.truncf %83 : vector<8x32xf32> to vector<8x32xbf16>
      %cst_32 = arith.constant dense<0.000000e+00> : vector<8x32xf32>
      %85 = tpu.matmul %84, %3, %cst_32 {dimension_numbers = #tpu.dot_dimension_numbers<[1], [0], [0], [1], [0, 0, 1, 1], [], []>} : vector<8x32xbf16>, vector<32x32xbf16>, vector<8x32xf32> -> vector<8x32xf32>
      %86 = arith.addf %85, %9 : vector<8x32xf32>
      %87 = arith.addf %54, %70 : vector<8x32xf32>
      %cst_33 = arith.constant 2.000000e+00 : f32
      %88 = vector.broadcast %cst_33 : f32 to vector<8x32xf32>
      %89 = arith.mulf %88, %87 : vector<8x32xf32>
      %90 = arith.addf %38, %89 : vector<8x32xf32>
      %91 = arith.addf %90, %86 : vector<8x32xf32>
      %92 = arith.mulf %24, %91 : vector<8x32xf32>
      %93 = arith.addf %arg9, %92 : vector<8x32xf32>
      %c1_i32_34 = arith.constant 1 : i32
      %94 = arith.truncf %93 : vector<8x32xf32> to vector<8x32xbf16>
      %cst_35 = arith.constant dense<0.000000e+00> : vector<8x32xf32>
      %95 = tpu.matmul %94, %1, %cst_35 {dimension_numbers = #tpu.dot_dimension_numbers<[1], [0], [0], [1], [0, 0, 1, 1], [], []>} : vector<8x32xbf16>, vector<32x32xbf16>, vector<8x32xf32> -> vector<8x32xf32>
      %96 = arith.addf %95, %6 : vector<8x32xf32>
      %cst_36 = arith.constant 0.000000e+00 : f32
      %97 = vector.broadcast %cst_36 : f32 to vector<8x32xf32>
      %98 = arith.maximumf %96, %97 : vector<8x32xf32>
      %99 = math.absf %96 : vector<8x32xf32>
      %cst_37 = arith.constant 0.000000e+00 : f32
      %100 = vector.broadcast %cst_37 : f32 to vector<8x32xf32>
      %101 = arith.subf %100, %99 : vector<8x32xf32>
      %102 = math.exp %101 : vector<8x32xf32>
      %103 = math.log1p %102 : vector<8x32xf32>
      %104 = arith.addf %98, %103 : vector<8x32xf32>
      %105 = arith.truncf %104 : vector<8x32xf32> to vector<8x32xbf16>
      %cst_38 = arith.constant dense<0.000000e+00> : vector<8x32xf32>
      %106 = tpu.matmul %105, %3, %cst_38 {dimension_numbers = #tpu.dot_dimension_numbers<[1], [0], [0], [1], [0, 0, 1, 1], [], []>} : vector<8x32xbf16>, vector<32x32xbf16>, vector<8x32xf32> -> vector<8x32xf32>
      %107 = arith.addf %106, %9 : vector<8x32xf32>
      %108 = arith.mulf %21, %107 : vector<8x32xf32>
      %109 = arith.addf %93, %108 : vector<8x32xf32>
      %110 = arith.truncf %109 : vector<8x32xf32> to vector<8x32xbf16>
      %cst_39 = arith.constant dense<0.000000e+00> : vector<8x32xf32>
      %111 = tpu.matmul %110, %1, %cst_39 {dimension_numbers = #tpu.dot_dimension_numbers<[1], [0], [0], [1], [0, 0, 1, 1], [], []>} : vector<8x32xbf16>, vector<32x32xbf16>, vector<8x32xf32> -> vector<8x32xf32>
      %112 = arith.addf %111, %6 : vector<8x32xf32>
      %cst_40 = arith.constant 0.000000e+00 : f32
      %113 = vector.broadcast %cst_40 : f32 to vector<8x32xf32>
      %114 = arith.maximumf %112, %113 : vector<8x32xf32>
      %115 = math.absf %112 : vector<8x32xf32>
      %cst_41 = arith.constant 0.000000e+00 : f32
      %116 = vector.broadcast %cst_41 : f32 to vector<8x32xf32>
      %117 = arith.subf %116, %115 : vector<8x32xf32>
      %118 = math.exp %117 : vector<8x32xf32>
      %119 = math.log1p %118 : vector<8x32xf32>
      %120 = arith.addf %114, %119 : vector<8x32xf32>
      %121 = arith.truncf %120 : vector<8x32xf32> to vector<8x32xbf16>
      %cst_42 = arith.constant dense<0.000000e+00> : vector<8x32xf32>
      %122 = tpu.matmul %121, %3, %cst_42 {dimension_numbers = #tpu.dot_dimension_numbers<[1], [0], [0], [1], [0, 0, 1, 1], [], []>} : vector<8x32xbf16>, vector<32x32xbf16>, vector<8x32xf32> -> vector<8x32xf32>
      %123 = arith.addf %122, %9 : vector<8x32xf32>
      %124 = arith.mulf %21, %123 : vector<8x32xf32>
      %125 = arith.addf %93, %124 : vector<8x32xf32>
      %126 = arith.truncf %125 : vector<8x32xf32> to vector<8x32xbf16>
      %cst_43 = arith.constant dense<0.000000e+00> : vector<8x32xf32>
      %127 = tpu.matmul %126, %1, %cst_43 {dimension_numbers = #tpu.dot_dimension_numbers<[1], [0], [0], [1], [0, 0, 1, 1], [], []>} : vector<8x32xbf16>, vector<32x32xbf16>, vector<8x32xf32> -> vector<8x32xf32>
      %128 = arith.addf %127, %6 : vector<8x32xf32>
      %cst_44 = arith.constant 0.000000e+00 : f32
      %129 = vector.broadcast %cst_44 : f32 to vector<8x32xf32>
      %130 = arith.maximumf %128, %129 : vector<8x32xf32>
      %131 = math.absf %128 : vector<8x32xf32>
      %cst_45 = arith.constant 0.000000e+00 : f32
      %132 = vector.broadcast %cst_45 : f32 to vector<8x32xf32>
      %133 = arith.subf %132, %131 : vector<8x32xf32>
      %134 = math.exp %133 : vector<8x32xf32>
      %135 = math.log1p %134 : vector<8x32xf32>
      %136 = arith.addf %130, %135 : vector<8x32xf32>
      %137 = arith.truncf %136 : vector<8x32xf32> to vector<8x32xbf16>
      %cst_46 = arith.constant dense<0.000000e+00> : vector<8x32xf32>
      %138 = tpu.matmul %137, %3, %cst_46 {dimension_numbers = #tpu.dot_dimension_numbers<[1], [0], [0], [1], [0, 0, 1, 1], [], []>} : vector<8x32xbf16>, vector<32x32xbf16>, vector<8x32xf32> -> vector<8x32xf32>
      %139 = arith.addf %138, %9 : vector<8x32xf32>
      %140 = arith.mulf %22, %139 : vector<8x32xf32>
      %141 = arith.addf %93, %140 : vector<8x32xf32>
      %142 = arith.truncf %141 : vector<8x32xf32> to vector<8x32xbf16>
      %cst_47 = arith.constant dense<0.000000e+00> : vector<8x32xf32>
      %143 = tpu.matmul %142, %1, %cst_47 {dimension_numbers = #tpu.dot_dimension_numbers<[1], [0], [0], [1], [0, 0, 1, 1], [], []>} : vector<8x32xbf16>, vector<32x32xbf16>, vector<8x32xf32> -> vector<8x32xf32>
      %144 = arith.addf %143, %6 : vector<8x32xf32>
      %cst_48 = arith.constant 0.000000e+00 : f32
      %145 = vector.broadcast %cst_48 : f32 to vector<8x32xf32>
      %146 = arith.maximumf %144, %145 : vector<8x32xf32>
      %147 = math.absf %144 : vector<8x32xf32>
      %cst_49 = arith.constant 0.000000e+00 : f32
      %148 = vector.broadcast %cst_49 : f32 to vector<8x32xf32>
      %149 = arith.subf %148, %147 : vector<8x32xf32>
      %150 = math.exp %149 : vector<8x32xf32>
      %151 = math.log1p %150 : vector<8x32xf32>
      %152 = arith.addf %146, %151 : vector<8x32xf32>
      %153 = arith.truncf %152 : vector<8x32xf32> to vector<8x32xbf16>
      %cst_50 = arith.constant dense<0.000000e+00> : vector<8x32xf32>
      %154 = tpu.matmul %153, %3, %cst_50 {dimension_numbers = #tpu.dot_dimension_numbers<[1], [0], [0], [1], [0, 0, 1, 1], [], []>} : vector<8x32xbf16>, vector<32x32xbf16>, vector<8x32xf32> -> vector<8x32xf32>
      %155 = arith.addf %154, %9 : vector<8x32xf32>
      %156 = arith.addf %123, %139 : vector<8x32xf32>
      %cst_51 = arith.constant 2.000000e+00 : f32
      %157 = vector.broadcast %cst_51 : f32 to vector<8x32xf32>
      %158 = arith.mulf %157, %156 : vector<8x32xf32>
      %159 = arith.addf %107, %158 : vector<8x32xf32>
      %160 = arith.addf %159, %155 : vector<8x32xf32>
      %161 = arith.mulf %24, %160 : vector<8x32xf32>
      %162 = arith.addf %93, %161 : vector<8x32xf32>
      %c2_i32 = arith.constant 2 : i32
      %163 = arith.truncf %162 : vector<8x32xf32> to vector<8x32xbf16>
      %cst_52 = arith.constant dense<0.000000e+00> : vector<8x32xf32>
      %164 = tpu.matmul %163, %1, %cst_52 {dimension_numbers = #tpu.dot_dimension_numbers<[1], [0], [0], [1], [0, 0, 1, 1], [], []>} : vector<8x32xbf16>, vector<32x32xbf16>, vector<8x32xf32> -> vector<8x32xf32>
      %165 = arith.addf %164, %6 : vector<8x32xf32>
      %cst_53 = arith.constant 0.000000e+00 : f32
      %166 = vector.broadcast %cst_53 : f32 to vector<8x32xf32>
      %167 = arith.maximumf %165, %166 : vector<8x32xf32>
      %168 = math.absf %165 : vector<8x32xf32>
      %cst_54 = arith.constant 0.000000e+00 : f32
      %169 = vector.broadcast %cst_54 : f32 to vector<8x32xf32>
      %170 = arith.subf %169, %168 : vector<8x32xf32>
      %171 = math.exp %170 : vector<8x32xf32>
      %172 = math.log1p %171 : vector<8x32xf32>
      %173 = arith.addf %167, %172 : vector<8x32xf32>
      %174 = arith.truncf %173 : vector<8x32xf32> to vector<8x32xbf16>
      %cst_55 = arith.constant dense<0.000000e+00> : vector<8x32xf32>
      %175 = tpu.matmul %174, %3, %cst_55 {dimension_numbers = #tpu.dot_dimension_numbers<[1], [0], [0], [1], [0, 0, 1, 1], [], []>} : vector<8x32xbf16>, vector<32x32xbf16>, vector<8x32xf32> -> vector<8x32xf32>
      %176 = arith.addf %175, %9 : vector<8x32xf32>
      %177 = arith.mulf %21, %176 : vector<8x32xf32>
      %178 = arith.addf %162, %177 : vector<8x32xf32>
      %179 = arith.truncf %178 : vector<8x32xf32> to vector<8x32xbf16>
      %cst_56 = arith.constant dense<0.000000e+00> : vector<8x32xf32>
      %180 = tpu.matmul %179, %1, %cst_56 {dimension_numbers = #tpu.dot_dimension_numbers<[1], [0], [0], [1], [0, 0, 1, 1], [], []>} : vector<8x32xbf16>, vector<32x32xbf16>, vector<8x32xf32> -> vector<8x32xf32>
      %181 = arith.addf %180, %6 : vector<8x32xf32>
      %cst_57 = arith.constant 0.000000e+00 : f32
      %182 = vector.broadcast %cst_57 : f32 to vector<8x32xf32>
      %183 = arith.maximumf %181, %182 : vector<8x32xf32>
      %184 = math.absf %181 : vector<8x32xf32>
      %cst_58 = arith.constant 0.000000e+00 : f32
      %185 = vector.broadcast %cst_58 : f32 to vector<8x32xf32>
      %186 = arith.subf %185, %184 : vector<8x32xf32>
      %187 = math.exp %186 : vector<8x32xf32>
      %188 = math.log1p %187 : vector<8x32xf32>
      %189 = arith.addf %183, %188 : vector<8x32xf32>
      %190 = arith.truncf %189 : vector<8x32xf32> to vector<8x32xbf16>
      %cst_59 = arith.constant dense<0.000000e+00> : vector<8x32xf32>
      %191 = tpu.matmul %190, %3, %cst_59 {dimension_numbers = #tpu.dot_dimension_numbers<[1], [0], [0], [1], [0, 0, 1, 1], [], []>} : vector<8x32xbf16>, vector<32x32xbf16>, vector<8x32xf32> -> vector<8x32xf32>
      %192 = arith.addf %191, %9 : vector<8x32xf32>
      %193 = arith.mulf %21, %192 : vector<8x32xf32>
      %194 = arith.addf %162, %193 : vector<8x32xf32>
      %195 = arith.truncf %194 : vector<8x32xf32> to vector<8x32xbf16>
      %cst_60 = arith.constant dense<0.000000e+00> : vector<8x32xf32>
      %196 = tpu.matmul %195, %1, %cst_60 {dimension_numbers = #tpu.dot_dimension_numbers<[1], [0], [0], [1], [0, 0, 1, 1], [], []>} : vector<8x32xbf16>, vector<32x32xbf16>, vector<8x32xf32> -> vector<8x32xf32>
      %197 = arith.addf %196, %6 : vector<8x32xf32>
      %cst_61 = arith.constant 0.000000e+00 : f32
      %198 = vector.broadcast %cst_61 : f32 to vector<8x32xf32>
      %199 = arith.maximumf %197, %198 : vector<8x32xf32>
      %200 = math.absf %197 : vector<8x32xf32>
      %cst_62 = arith.constant 0.000000e+00 : f32
      %201 = vector.broadcast %cst_62 : f32 to vector<8x32xf32>
      %202 = arith.subf %201, %200 : vector<8x32xf32>
      %203 = math.exp %202 : vector<8x32xf32>
      %204 = math.log1p %203 : vector<8x32xf32>
      %205 = arith.addf %199, %204 : vector<8x32xf32>
      %206 = arith.truncf %205 : vector<8x32xf32> to vector<8x32xbf16>
      %cst_63 = arith.constant dense<0.000000e+00> : vector<8x32xf32>
      %207 = tpu.matmul %206, %3, %cst_63 {dimension_numbers = #tpu.dot_dimension_numbers<[1], [0], [0], [1], [0, 0, 1, 1], [], []>} : vector<8x32xbf16>, vector<32x32xbf16>, vector<8x32xf32> -> vector<8x32xf32>
      %208 = arith.addf %207, %9 : vector<8x32xf32>
      %209 = arith.mulf %22, %208 : vector<8x32xf32>
      %210 = arith.addf %162, %209 : vector<8x32xf32>
      %211 = arith.truncf %210 : vector<8x32xf32> to vector<8x32xbf16>
      %cst_64 = arith.constant dense<0.000000e+00> : vector<8x32xf32>
      %212 = tpu.matmul %211, %1, %cst_64 {dimension_numbers = #tpu.dot_dimension_numbers<[1], [0], [0], [1], [0, 0, 1, 1], [], []>} : vector<8x32xbf16>, vector<32x32xbf16>, vector<8x32xf32> -> vector<8x32xf32>
      %213 = arith.addf %212, %6 : vector<8x32xf32>
      %cst_65 = arith.constant 0.000000e+00 : f32
      %214 = vector.broadcast %cst_65 : f32 to vector<8x32xf32>
      %215 = arith.maximumf %213, %214 : vector<8x32xf32>
      %216 = math.absf %213 : vector<8x32xf32>
      %cst_66 = arith.constant 0.000000e+00 : f32
      %217 = vector.broadcast %cst_66 : f32 to vector<8x32xf32>
      %218 = arith.subf %217, %216 : vector<8x32xf32>
      %219 = math.exp %218 : vector<8x32xf32>
      %220 = math.log1p %219 : vector<8x32xf32>
      %221 = arith.addf %215, %220 : vector<8x32xf32>
      %222 = arith.truncf %221 : vector<8x32xf32> to vector<8x32xbf16>
      %cst_67 = arith.constant dense<0.000000e+00> : vector<8x32xf32>
      %223 = tpu.matmul %222, %3, %cst_67 {dimension_numbers = #tpu.dot_dimension_numbers<[1], [0], [0], [1], [0, 0, 1, 1], [], []>} : vector<8x32xbf16>, vector<32x32xbf16>, vector<8x32xf32> -> vector<8x32xf32>
      %224 = arith.addf %223, %9 : vector<8x32xf32>
      %225 = arith.addf %192, %208 : vector<8x32xf32>
      %cst_68 = arith.constant 2.000000e+00 : f32
      %226 = vector.broadcast %cst_68 : f32 to vector<8x32xf32>
      %227 = arith.mulf %226, %225 : vector<8x32xf32>
      %228 = arith.addf %176, %227 : vector<8x32xf32>
      %229 = arith.addf %228, %224 : vector<8x32xf32>
      %230 = arith.mulf %24, %229 : vector<8x32xf32>
      %231 = arith.addf %162, %230 : vector<8x32xf32>
      %c3_i32 = arith.constant 3 : i32
      %232 = arith.truncf %231 : vector<8x32xf32> to vector<8x32xbf16>
      %cst_69 = arith.constant dense<0.000000e+00> : vector<8x32xf32>
      %233 = tpu.matmul %232, %1, %cst_69 {dimension_numbers = #tpu.dot_dimension_numbers<[1], [0], [0], [1], [0, 0, 1, 1], [], []>} : vector<8x32xbf16>, vector<32x32xbf16>, vector<8x32xf32> -> vector<8x32xf32>
      %234 = arith.addf %233, %6 : vector<8x32xf32>
      %cst_70 = arith.constant 0.000000e+00 : f32
      %235 = vector.broadcast %cst_70 : f32 to vector<8x32xf32>
      %236 = arith.maximumf %234, %235 : vector<8x32xf32>
      %237 = math.absf %234 : vector<8x32xf32>
      %cst_71 = arith.constant 0.000000e+00 : f32
      %238 = vector.broadcast %cst_71 : f32 to vector<8x32xf32>
      %239 = arith.subf %238, %237 : vector<8x32xf32>
      %240 = math.exp %239 : vector<8x32xf32>
      %241 = math.log1p %240 : vector<8x32xf32>
      %242 = arith.addf %236, %241 : vector<8x32xf32>
      %243 = arith.truncf %242 : vector<8x32xf32> to vector<8x32xbf16>
      %cst_72 = arith.constant dense<0.000000e+00> : vector<8x32xf32>
      %244 = tpu.matmul %243, %3, %cst_72 {dimension_numbers = #tpu.dot_dimension_numbers<[1], [0], [0], [1], [0, 0, 1, 1], [], []>} : vector<8x32xbf16>, vector<32x32xbf16>, vector<8x32xf32> -> vector<8x32xf32>
      %245 = arith.addf %244, %9 : vector<8x32xf32>
      %246 = arith.mulf %21, %245 : vector<8x32xf32>
      %247 = arith.addf %231, %246 : vector<8x32xf32>
      %248 = arith.truncf %247 : vector<8x32xf32> to vector<8x32xbf16>
      %cst_73 = arith.constant dense<0.000000e+00> : vector<8x32xf32>
      %249 = tpu.matmul %248, %1, %cst_73 {dimension_numbers = #tpu.dot_dimension_numbers<[1], [0], [0], [1], [0, 0, 1, 1], [], []>} : vector<8x32xbf16>, vector<32x32xbf16>, vector<8x32xf32> -> vector<8x32xf32>
      %250 = arith.addf %249, %6 : vector<8x32xf32>
      %cst_74 = arith.constant 0.000000e+00 : f32
      %251 = vector.broadcast %cst_74 : f32 to vector<8x32xf32>
      %252 = arith.maximumf %250, %251 : vector<8x32xf32>
      %253 = math.absf %250 : vector<8x32xf32>
      %cst_75 = arith.constant 0.000000e+00 : f32
      %254 = vector.broadcast %cst_75 : f32 to vector<8x32xf32>
      %255 = arith.subf %254, %253 : vector<8x32xf32>
      %256 = math.exp %255 : vector<8x32xf32>
      %257 = math.log1p %256 : vector<8x32xf32>
      %258 = arith.addf %252, %257 : vector<8x32xf32>
      %259 = arith.truncf %258 : vector<8x32xf32> to vector<8x32xbf16>
      %cst_76 = arith.constant dense<0.000000e+00> : vector<8x32xf32>
      %260 = tpu.matmul %259, %3, %cst_76 {dimension_numbers = #tpu.dot_dimension_numbers<[1], [0], [0], [1], [0, 0, 1, 1], [], []>} : vector<8x32xbf16>, vector<32x32xbf16>, vector<8x32xf32> -> vector<8x32xf32>
      %261 = arith.addf %260, %9 : vector<8x32xf32>
      %262 = arith.mulf %21, %261 : vector<8x32xf32>
      %263 = arith.addf %231, %262 : vector<8x32xf32>
      %264 = arith.truncf %263 : vector<8x32xf32> to vector<8x32xbf16>
      %cst_77 = arith.constant dense<0.000000e+00> : vector<8x32xf32>
      %265 = tpu.matmul %264, %1, %cst_77 {dimension_numbers = #tpu.dot_dimension_numbers<[1], [0], [0], [1], [0, 0, 1, 1], [], []>} : vector<8x32xbf16>, vector<32x32xbf16>, vector<8x32xf32> -> vector<8x32xf32>
      %266 = arith.addf %265, %6 : vector<8x32xf32>
      %cst_78 = arith.constant 0.000000e+00 : f32
      %267 = vector.broadcast %cst_78 : f32 to vector<8x32xf32>
      %268 = arith.maximumf %266, %267 : vector<8x32xf32>
      %269 = math.absf %266 : vector<8x32xf32>
      %cst_79 = arith.constant 0.000000e+00 : f32
      %270 = vector.broadcast %cst_79 : f32 to vector<8x32xf32>
      %271 = arith.subf %270, %269 : vector<8x32xf32>
      %272 = math.exp %271 : vector<8x32xf32>
      %273 = math.log1p %272 : vector<8x32xf32>
      %274 = arith.addf %268, %273 : vector<8x32xf32>
      %275 = arith.truncf %274 : vector<8x32xf32> to vector<8x32xbf16>
      %cst_80 = arith.constant dense<0.000000e+00> : vector<8x32xf32>
      %276 = tpu.matmul %275, %3, %cst_80 {dimension_numbers = #tpu.dot_dimension_numbers<[1], [0], [0], [1], [0, 0, 1, 1], [], []>} : vector<8x32xbf16>, vector<32x32xbf16>, vector<8x32xf32> -> vector<8x32xf32>
      %277 = arith.addf %276, %9 : vector<8x32xf32>
      %278 = arith.mulf %22, %277 : vector<8x32xf32>
      %279 = arith.addf %231, %278 : vector<8x32xf32>
      %280 = arith.truncf %279 : vector<8x32xf32> to vector<8x32xbf16>
      %cst_81 = arith.constant dense<0.000000e+00> : vector<8x32xf32>
      %281 = tpu.matmul %280, %1, %cst_81 {dimension_numbers = #tpu.dot_dimension_numbers<[1], [0], [0], [1], [0, 0, 1, 1], [], []>} : vector<8x32xbf16>, vector<32x32xbf16>, vector<8x32xf32> -> vector<8x32xf32>
      %282 = arith.addf %281, %6 : vector<8x32xf32>
      %cst_82 = arith.constant 0.000000e+00 : f32
      %283 = vector.broadcast %cst_82 : f32 to vector<8x32xf32>
      %284 = arith.maximumf %282, %283 : vector<8x32xf32>
      %285 = math.absf %282 : vector<8x32xf32>
      %cst_83 = arith.constant 0.000000e+00 : f32
      %286 = vector.broadcast %cst_83 : f32 to vector<8x32xf32>
      %287 = arith.subf %286, %285 : vector<8x32xf32>
      %288 = math.exp %287 : vector<8x32xf32>
      %289 = math.log1p %288 : vector<8x32xf32>
      %290 = arith.addf %284, %289 : vector<8x32xf32>
      %291 = arith.truncf %290 : vector<8x32xf32> to vector<8x32xbf16>
      %cst_84 = arith.constant dense<0.000000e+00> : vector<8x32xf32>
      %292 = tpu.matmul %291, %3, %cst_84 {dimension_numbers = #tpu.dot_dimension_numbers<[1], [0], [0], [1], [0, 0, 1, 1], [], []>} : vector<8x32xbf16>, vector<32x32xbf16>, vector<8x32xf32> -> vector<8x32xf32>
      %293 = arith.addf %292, %9 : vector<8x32xf32>
      %294 = arith.addf %261, %277 : vector<8x32xf32>
      %cst_85 = arith.constant 2.000000e+00 : f32
      %295 = vector.broadcast %cst_85 : f32 to vector<8x32xf32>
      %296 = arith.mulf %295, %294 : vector<8x32xf32>
      %297 = arith.addf %245, %296 : vector<8x32xf32>
      %298 = arith.addf %297, %293 : vector<8x32xf32>
      %299 = arith.mulf %24, %298 : vector<8x32xf32>
      %300 = arith.addf %231, %299 : vector<8x32xf32>
      %c4_i32 = arith.constant 4 : i32
      %301 = arith.truncf %300 : vector<8x32xf32> to vector<8x32xbf16>
      %cst_86 = arith.constant dense<0.000000e+00> : vector<8x32xf32>
      %302 = tpu.matmul %301, %1, %cst_86 {dimension_numbers = #tpu.dot_dimension_numbers<[1], [0], [0], [1], [0, 0, 1, 1], [], []>} : vector<8x32xbf16>, vector<32x32xbf16>, vector<8x32xf32> -> vector<8x32xf32>
      %303 = arith.addf %302, %6 : vector<8x32xf32>
      %cst_87 = arith.constant 0.000000e+00 : f32
      %304 = vector.broadcast %cst_87 : f32 to vector<8x32xf32>
      %305 = arith.maximumf %303, %304 : vector<8x32xf32>
      %306 = math.absf %303 : vector<8x32xf32>
      %cst_88 = arith.constant 0.000000e+00 : f32
      %307 = vector.broadcast %cst_88 : f32 to vector<8x32xf32>
      %308 = arith.subf %307, %306 : vector<8x32xf32>
      %309 = math.exp %308 : vector<8x32xf32>
      %310 = math.log1p %309 : vector<8x32xf32>
      %311 = arith.addf %305, %310 : vector<8x32xf32>
      %312 = arith.truncf %311 : vector<8x32xf32> to vector<8x32xbf16>
      %cst_89 = arith.constant dense<0.000000e+00> : vector<8x32xf32>
      %313 = tpu.matmul %312, %3, %cst_89 {dimension_numbers = #tpu.dot_dimension_numbers<[1], [0], [0], [1], [0, 0, 1, 1], [], []>} : vector<8x32xbf16>, vector<32x32xbf16>, vector<8x32xf32> -> vector<8x32xf32>
      %314 = arith.addf %313, %9 : vector<8x32xf32>
      %315 = arith.mulf %21, %314 : vector<8x32xf32>
      %316 = arith.addf %300, %315 : vector<8x32xf32>
      %317 = arith.truncf %316 : vector<8x32xf32> to vector<8x32xbf16>
      %cst_90 = arith.constant dense<0.000000e+00> : vector<8x32xf32>
      %318 = tpu.matmul %317, %1, %cst_90 {dimension_numbers = #tpu.dot_dimension_numbers<[1], [0], [0], [1], [0, 0, 1, 1], [], []>} : vector<8x32xbf16>, vector<32x32xbf16>, vector<8x32xf32> -> vector<8x32xf32>
      %319 = arith.addf %318, %6 : vector<8x32xf32>
      %cst_91 = arith.constant 0.000000e+00 : f32
      %320 = vector.broadcast %cst_91 : f32 to vector<8x32xf32>
      %321 = arith.maximumf %319, %320 : vector<8x32xf32>
      %322 = math.absf %319 : vector<8x32xf32>
      %cst_92 = arith.constant 0.000000e+00 : f32
      %323 = vector.broadcast %cst_92 : f32 to vector<8x32xf32>
      %324 = arith.subf %323, %322 : vector<8x32xf32>
      %325 = math.exp %324 : vector<8x32xf32>
      %326 = math.log1p %325 : vector<8x32xf32>
      %327 = arith.addf %321, %326 : vector<8x32xf32>
      %328 = arith.truncf %327 : vector<8x32xf32> to vector<8x32xbf16>
      %cst_93 = arith.constant dense<0.000000e+00> : vector<8x32xf32>
      %329 = tpu.matmul %328, %3, %cst_93 {dimension_numbers = #tpu.dot_dimension_numbers<[1], [0], [0], [1], [0, 0, 1, 1], [], []>} : vector<8x32xbf16>, vector<32x32xbf16>, vector<8x32xf32> -> vector<8x32xf32>
      %330 = arith.addf %329, %9 : vector<8x32xf32>
      %331 = arith.mulf %21, %330 : vector<8x32xf32>
      %332 = arith.addf %300, %331 : vector<8x32xf32>
      %333 = arith.truncf %332 : vector<8x32xf32> to vector<8x32xbf16>
      %cst_94 = arith.constant dense<0.000000e+00> : vector<8x32xf32>
      %334 = tpu.matmul %333, %1, %cst_94 {dimension_numbers = #tpu.dot_dimension_numbers<[1], [0], [0], [1], [0, 0, 1, 1], [], []>} : vector<8x32xbf16>, vector<32x32xbf16>, vector<8x32xf32> -> vector<8x32xf32>
      %335 = arith.addf %334, %6 : vector<8x32xf32>
      %cst_95 = arith.constant 0.000000e+00 : f32
      %336 = vector.broadcast %cst_95 : f32 to vector<8x32xf32>
      %337 = arith.maximumf %335, %336 : vector<8x32xf32>
      %338 = math.absf %335 : vector<8x32xf32>
      %cst_96 = arith.constant 0.000000e+00 : f32
      %339 = vector.broadcast %cst_96 : f32 to vector<8x32xf32>
      %340 = arith.subf %339, %338 : vector<8x32xf32>
      %341 = math.exp %340 : vector<8x32xf32>
      %342 = math.log1p %341 : vector<8x32xf32>
      %343 = arith.addf %337, %342 : vector<8x32xf32>
      %344 = arith.truncf %343 : vector<8x32xf32> to vector<8x32xbf16>
      %cst_97 = arith.constant dense<0.000000e+00> : vector<8x32xf32>
      %345 = tpu.matmul %344, %3, %cst_97 {dimension_numbers = #tpu.dot_dimension_numbers<[1], [0], [0], [1], [0, 0, 1, 1], [], []>} : vector<8x32xbf16>, vector<32x32xbf16>, vector<8x32xf32> -> vector<8x32xf32>
      %346 = arith.addf %345, %9 : vector<8x32xf32>
      %347 = arith.mulf %22, %346 : vector<8x32xf32>
      %348 = arith.addf %300, %347 : vector<8x32xf32>
      %349 = arith.truncf %348 : vector<8x32xf32> to vector<8x32xbf16>
      %cst_98 = arith.constant dense<0.000000e+00> : vector<8x32xf32>
      %350 = tpu.matmul %349, %1, %cst_98 {dimension_numbers = #tpu.dot_dimension_numbers<[1], [0], [0], [1], [0, 0, 1, 1], [], []>} : vector<8x32xbf16>, vector<32x32xbf16>, vector<8x32xf32> -> vector<8x32xf32>
      %351 = arith.addf %350, %6 : vector<8x32xf32>
      %cst_99 = arith.constant 0.000000e+00 : f32
      %352 = vector.broadcast %cst_99 : f32 to vector<8x32xf32>
      %353 = arith.maximumf %351, %352 : vector<8x32xf32>
      %354 = math.absf %351 : vector<8x32xf32>
      %cst_100 = arith.constant 0.000000e+00 : f32
      %355 = vector.broadcast %cst_100 : f32 to vector<8x32xf32>
      %356 = arith.subf %355, %354 : vector<8x32xf32>
      %357 = math.exp %356 : vector<8x32xf32>
      %358 = math.log1p %357 : vector<8x32xf32>
      %359 = arith.addf %353, %358 : vector<8x32xf32>
      %360 = arith.truncf %359 : vector<8x32xf32> to vector<8x32xbf16>
      %cst_101 = arith.constant dense<0.000000e+00> : vector<8x32xf32>
      %361 = tpu.matmul %360, %3, %cst_101 {dimension_numbers = #tpu.dot_dimension_numbers<[1], [0], [0], [1], [0, 0, 1, 1], [], []>} : vector<8x32xbf16>, vector<32x32xbf16>, vector<8x32xf32> -> vector<8x32xf32>
      %362 = arith.addf %361, %9 : vector<8x32xf32>
      %363 = arith.addf %330, %346 : vector<8x32xf32>
      %cst_102 = arith.constant 2.000000e+00 : f32
      %364 = vector.broadcast %cst_102 : f32 to vector<8x32xf32>
      %365 = arith.mulf %364, %363 : vector<8x32xf32>
      %366 = arith.addf %314, %365 : vector<8x32xf32>
      %367 = arith.addf %366, %362 : vector<8x32xf32>
      %368 = arith.mulf %24, %367 : vector<8x32xf32>
      %369 = arith.addf %300, %368 : vector<8x32xf32>
      %c5_i32 = arith.constant 5 : i32
      %370 = arith.truncf %369 : vector<8x32xf32> to vector<8x32xbf16>
      %cst_103 = arith.constant dense<0.000000e+00> : vector<8x32xf32>
      %371 = tpu.matmul %370, %1, %cst_103 {dimension_numbers = #tpu.dot_dimension_numbers<[1], [0], [0], [1], [0, 0, 1, 1], [], []>} : vector<8x32xbf16>, vector<32x32xbf16>, vector<8x32xf32> -> vector<8x32xf32>
      %372 = arith.addf %371, %6 : vector<8x32xf32>
      %cst_104 = arith.constant 0.000000e+00 : f32
      %373 = vector.broadcast %cst_104 : f32 to vector<8x32xf32>
      %374 = arith.maximumf %372, %373 : vector<8x32xf32>
      %375 = math.absf %372 : vector<8x32xf32>
      %cst_105 = arith.constant 0.000000e+00 : f32
      %376 = vector.broadcast %cst_105 : f32 to vector<8x32xf32>
      %377 = arith.subf %376, %375 : vector<8x32xf32>
      %378 = math.exp %377 : vector<8x32xf32>
      %379 = math.log1p %378 : vector<8x32xf32>
      %380 = arith.addf %374, %379 : vector<8x32xf32>
      %381 = arith.truncf %380 : vector<8x32xf32> to vector<8x32xbf16>
      %cst_106 = arith.constant dense<0.000000e+00> : vector<8x32xf32>
      %382 = tpu.matmul %381, %3, %cst_106 {dimension_numbers = #tpu.dot_dimension_numbers<[1], [0], [0], [1], [0, 0, 1, 1], [], []>} : vector<8x32xbf16>, vector<32x32xbf16>, vector<8x32xf32> -> vector<8x32xf32>
      %383 = arith.addf %382, %9 : vector<8x32xf32>
      %384 = arith.mulf %21, %383 : vector<8x32xf32>
      %385 = arith.addf %369, %384 : vector<8x32xf32>
      %386 = arith.truncf %385 : vector<8x32xf32> to vector<8x32xbf16>
      %cst_107 = arith.constant dense<0.000000e+00> : vector<8x32xf32>
      %387 = tpu.matmul %386, %1, %cst_107 {dimension_numbers = #tpu.dot_dimension_numbers<[1], [0], [0], [1], [0, 0, 1, 1], [], []>} : vector<8x32xbf16>, vector<32x32xbf16>, vector<8x32xf32> -> vector<8x32xf32>
      %388 = arith.addf %387, %6 : vector<8x32xf32>
      %cst_108 = arith.constant 0.000000e+00 : f32
      %389 = vector.broadcast %cst_108 : f32 to vector<8x32xf32>
      %390 = arith.maximumf %388, %389 : vector<8x32xf32>
      %391 = math.absf %388 : vector<8x32xf32>
      %cst_109 = arith.constant 0.000000e+00 : f32
      %392 = vector.broadcast %cst_109 : f32 to vector<8x32xf32>
      %393 = arith.subf %392, %391 : vector<8x32xf32>
      %394 = math.exp %393 : vector<8x32xf32>
      %395 = math.log1p %394 : vector<8x32xf32>
      %396 = arith.addf %390, %395 : vector<8x32xf32>
      %397 = arith.truncf %396 : vector<8x32xf32> to vector<8x32xbf16>
      %cst_110 = arith.constant dense<0.000000e+00> : vector<8x32xf32>
      %398 = tpu.matmul %397, %3, %cst_110 {dimension_numbers = #tpu.dot_dimension_numbers<[1], [0], [0], [1], [0, 0, 1, 1], [], []>} : vector<8x32xbf16>, vector<32x32xbf16>, vector<8x32xf32> -> vector<8x32xf32>
      %399 = arith.addf %398, %9 : vector<8x32xf32>
      %400 = arith.mulf %21, %399 : vector<8x32xf32>
      %401 = arith.addf %369, %400 : vector<8x32xf32>
      %402 = arith.truncf %401 : vector<8x32xf32> to vector<8x32xbf16>
      %cst_111 = arith.constant dense<0.000000e+00> : vector<8x32xf32>
      %403 = tpu.matmul %402, %1, %cst_111 {dimension_numbers = #tpu.dot_dimension_numbers<[1], [0], [0], [1], [0, 0, 1, 1], [], []>} : vector<8x32xbf16>, vector<32x32xbf16>, vector<8x32xf32> -> vector<8x32xf32>
      %404 = arith.addf %403, %6 : vector<8x32xf32>
      %cst_112 = arith.constant 0.000000e+00 : f32
      %405 = vector.broadcast %cst_112 : f32 to vector<8x32xf32>
      %406 = arith.maximumf %404, %405 : vector<8x32xf32>
      %407 = math.absf %404 : vector<8x32xf32>
      %cst_113 = arith.constant 0.000000e+00 : f32
      %408 = vector.broadcast %cst_113 : f32 to vector<8x32xf32>
      %409 = arith.subf %408, %407 : vector<8x32xf32>
      %410 = math.exp %409 : vector<8x32xf32>
      %411 = math.log1p %410 : vector<8x32xf32>
      %412 = arith.addf %406, %411 : vector<8x32xf32>
      %413 = arith.truncf %412 : vector<8x32xf32> to vector<8x32xbf16>
      %cst_114 = arith.constant dense<0.000000e+00> : vector<8x32xf32>
      %414 = tpu.matmul %413, %3, %cst_114 {dimension_numbers = #tpu.dot_dimension_numbers<[1], [0], [0], [1], [0, 0, 1, 1], [], []>} : vector<8x32xbf16>, vector<32x32xbf16>, vector<8x32xf32> -> vector<8x32xf32>
      %415 = arith.addf %414, %9 : vector<8x32xf32>
      %416 = arith.mulf %22, %415 : vector<8x32xf32>
      %417 = arith.addf %369, %416 : vector<8x32xf32>
      %418 = arith.truncf %417 : vector<8x32xf32> to vector<8x32xbf16>
      %cst_115 = arith.constant dense<0.000000e+00> : vector<8x32xf32>
      %419 = tpu.matmul %418, %1, %cst_115 {dimension_numbers = #tpu.dot_dimension_numbers<[1], [0], [0], [1], [0, 0, 1, 1], [], []>} : vector<8x32xbf16>, vector<32x32xbf16>, vector<8x32xf32> -> vector<8x32xf32>
      %420 = arith.addf %419, %6 : vector<8x32xf32>
      %cst_116 = arith.constant 0.000000e+00 : f32
      %421 = vector.broadcast %cst_116 : f32 to vector<8x32xf32>
      %422 = arith.maximumf %420, %421 : vector<8x32xf32>
      %423 = math.absf %420 : vector<8x32xf32>
      %cst_117 = arith.constant 0.000000e+00 : f32
      %424 = vector.broadcast %cst_117 : f32 to vector<8x32xf32>
      %425 = arith.subf %424, %423 : vector<8x32xf32>
      %426 = math.exp %425 : vector<8x32xf32>
      %427 = math.log1p %426 : vector<8x32xf32>
      %428 = arith.addf %422, %427 : vector<8x32xf32>
      %429 = arith.truncf %428 : vector<8x32xf32> to vector<8x32xbf16>
      %cst_118 = arith.constant dense<0.000000e+00> : vector<8x32xf32>
      %430 = tpu.matmul %429, %3, %cst_118 {dimension_numbers = #tpu.dot_dimension_numbers<[1], [0], [0], [1], [0, 0, 1, 1], [], []>} : vector<8x32xbf16>, vector<32x32xbf16>, vector<8x32xf32> -> vector<8x32xf32>
      %431 = arith.addf %430, %9 : vector<8x32xf32>
      %432 = arith.addf %399, %415 : vector<8x32xf32>
      %cst_119 = arith.constant 2.000000e+00 : f32
      %433 = vector.broadcast %cst_119 : f32 to vector<8x32xf32>
      %434 = arith.mulf %433, %432 : vector<8x32xf32>
      %435 = arith.addf %383, %434 : vector<8x32xf32>
      %436 = arith.addf %435, %431 : vector<8x32xf32>
      %437 = arith.mulf %24, %436 : vector<8x32xf32>
      %438 = arith.addf %369, %437 : vector<8x32xf32>
      %c6_i32 = arith.constant 6 : i32
      %439 = arith.truncf %438 : vector<8x32xf32> to vector<8x32xbf16>
      %cst_120 = arith.constant dense<0.000000e+00> : vector<8x32xf32>
      %440 = tpu.matmul %439, %1, %cst_120 {dimension_numbers = #tpu.dot_dimension_numbers<[1], [0], [0], [1], [0, 0, 1, 1], [], []>} : vector<8x32xbf16>, vector<32x32xbf16>, vector<8x32xf32> -> vector<8x32xf32>
      %441 = arith.addf %440, %6 : vector<8x32xf32>
      %cst_121 = arith.constant 0.000000e+00 : f32
      %442 = vector.broadcast %cst_121 : f32 to vector<8x32xf32>
      %443 = arith.maximumf %441, %442 : vector<8x32xf32>
      %444 = math.absf %441 : vector<8x32xf32>
      %cst_122 = arith.constant 0.000000e+00 : f32
      %445 = vector.broadcast %cst_122 : f32 to vector<8x32xf32>
      %446 = arith.subf %445, %444 : vector<8x32xf32>
      %447 = math.exp %446 : vector<8x32xf32>
      %448 = math.log1p %447 : vector<8x32xf32>
      %449 = arith.addf %443, %448 : vector<8x32xf32>
      %450 = arith.truncf %449 : vector<8x32xf32> to vector<8x32xbf16>
      %cst_123 = arith.constant dense<0.000000e+00> : vector<8x32xf32>
      %451 = tpu.matmul %450, %3, %cst_123 {dimension_numbers = #tpu.dot_dimension_numbers<[1], [0], [0], [1], [0, 0, 1, 1], [], []>} : vector<8x32xbf16>, vector<32x32xbf16>, vector<8x32xf32> -> vector<8x32xf32>
      %452 = arith.addf %451, %9 : vector<8x32xf32>
      %453 = arith.mulf %21, %452 : vector<8x32xf32>
      %454 = arith.addf %438, %453 : vector<8x32xf32>
      %455 = arith.truncf %454 : vector<8x32xf32> to vector<8x32xbf16>
      %cst_124 = arith.constant dense<0.000000e+00> : vector<8x32xf32>
      %456 = tpu.matmul %455, %1, %cst_124 {dimension_numbers = #tpu.dot_dimension_numbers<[1], [0], [0], [1], [0, 0, 1, 1], [], []>} : vector<8x32xbf16>, vector<32x32xbf16>, vector<8x32xf32> -> vector<8x32xf32>
      %457 = arith.addf %456, %6 : vector<8x32xf32>
      %cst_125 = arith.constant 0.000000e+00 : f32
      %458 = vector.broadcast %cst_125 : f32 to vector<8x32xf32>
      %459 = arith.maximumf %457, %458 : vector<8x32xf32>
      %460 = math.absf %457 : vector<8x32xf32>
      %cst_126 = arith.constant 0.000000e+00 : f32
      %461 = vector.broadcast %cst_126 : f32 to vector<8x32xf32>
      %462 = arith.subf %461, %460 : vector<8x32xf32>
      %463 = math.exp %462 : vector<8x32xf32>
      %464 = math.log1p %463 : vector<8x32xf32>
      %465 = arith.addf %459, %464 : vector<8x32xf32>
      %466 = arith.truncf %465 : vector<8x32xf32> to vector<8x32xbf16>
      %cst_127 = arith.constant dense<0.000000e+00> : vector<8x32xf32>
      %467 = tpu.matmul %466, %3, %cst_127 {dimension_numbers = #tpu.dot_dimension_numbers<[1], [0], [0], [1], [0, 0, 1, 1], [], []>} : vector<8x32xbf16>, vector<32x32xbf16>, vector<8x32xf32> -> vector<8x32xf32>
      %468 = arith.addf %467, %9 : vector<8x32xf32>
      %469 = arith.mulf %21, %468 : vector<8x32xf32>
      %470 = arith.addf %438, %469 : vector<8x32xf32>
      %471 = arith.truncf %470 : vector<8x32xf32> to vector<8x32xbf16>
      %cst_128 = arith.constant dense<0.000000e+00> : vector<8x32xf32>
      %472 = tpu.matmul %471, %1, %cst_128 {dimension_numbers = #tpu.dot_dimension_numbers<[1], [0], [0], [1], [0, 0, 1, 1], [], []>} : vector<8x32xbf16>, vector<32x32xbf16>, vector<8x32xf32> -> vector<8x32xf32>
      %473 = arith.addf %472, %6 : vector<8x32xf32>
      %cst_129 = arith.constant 0.000000e+00 : f32
      %474 = vector.broadcast %cst_129 : f32 to vector<8x32xf32>
      %475 = arith.maximumf %473, %474 : vector<8x32xf32>
      %476 = math.absf %473 : vector<8x32xf32>
      %cst_130 = arith.constant 0.000000e+00 : f32
      %477 = vector.broadcast %cst_130 : f32 to vector<8x32xf32>
      %478 = arith.subf %477, %476 : vector<8x32xf32>
      %479 = math.exp %478 : vector<8x32xf32>
      %480 = math.log1p %479 : vector<8x32xf32>
      %481 = arith.addf %475, %480 : vector<8x32xf32>
      %482 = arith.truncf %481 : vector<8x32xf32> to vector<8x32xbf16>
      %cst_131 = arith.constant dense<0.000000e+00> : vector<8x32xf32>
      %483 = tpu.matmul %482, %3, %cst_131 {dimension_numbers = #tpu.dot_dimension_numbers<[1], [0], [0], [1], [0, 0, 1, 1], [], []>} : vector<8x32xbf16>, vector<32x32xbf16>, vector<8x32xf32> -> vector<8x32xf32>
      %484 = arith.addf %483, %9 : vector<8x32xf32>
      %485 = arith.mulf %22, %484 : vector<8x32xf32>
      %486 = arith.addf %438, %485 : vector<8x32xf32>
      %487 = arith.truncf %486 : vector<8x32xf32> to vector<8x32xbf16>
      %cst_132 = arith.constant dense<0.000000e+00> : vector<8x32xf32>
      %488 = tpu.matmul %487, %1, %cst_132 {dimension_numbers = #tpu.dot_dimension_numbers<[1], [0], [0], [1], [0, 0, 1, 1], [], []>} : vector<8x32xbf16>, vector<32x32xbf16>, vector<8x32xf32> -> vector<8x32xf32>
      %489 = arith.addf %488, %6 : vector<8x32xf32>
      %cst_133 = arith.constant 0.000000e+00 : f32
      %490 = vector.broadcast %cst_133 : f32 to vector<8x32xf32>
      %491 = arith.maximumf %489, %490 : vector<8x32xf32>
      %492 = math.absf %489 : vector<8x32xf32>
      %cst_134 = arith.constant 0.000000e+00 : f32
      %493 = vector.broadcast %cst_134 : f32 to vector<8x32xf32>
      %494 = arith.subf %493, %492 : vector<8x32xf32>
      %495 = math.exp %494 : vector<8x32xf32>
      %496 = math.log1p %495 : vector<8x32xf32>
      %497 = arith.addf %491, %496 : vector<8x32xf32>
      %498 = arith.truncf %497 : vector<8x32xf32> to vector<8x32xbf16>
      %cst_135 = arith.constant dense<0.000000e+00> : vector<8x32xf32>
      %499 = tpu.matmul %498, %3, %cst_135 {dimension_numbers = #tpu.dot_dimension_numbers<[1], [0], [0], [1], [0, 0, 1, 1], [], []>} : vector<8x32xbf16>, vector<32x32xbf16>, vector<8x32xf32> -> vector<8x32xf32>
      %500 = arith.addf %499, %9 : vector<8x32xf32>
      %501 = arith.addf %468, %484 : vector<8x32xf32>
      %cst_136 = arith.constant 2.000000e+00 : f32
      %502 = vector.broadcast %cst_136 : f32 to vector<8x32xf32>
      %503 = arith.mulf %502, %501 : vector<8x32xf32>
      %504 = arith.addf %452, %503 : vector<8x32xf32>
      %505 = arith.addf %504, %500 : vector<8x32xf32>
      %506 = arith.mulf %24, %505 : vector<8x32xf32>
      %507 = arith.addf %438, %506 : vector<8x32xf32>
      %c7_i32_137 = arith.constant 7 : i32
      %508 = arith.truncf %507 : vector<8x32xf32> to vector<8x32xbf16>
      %cst_138 = arith.constant dense<0.000000e+00> : vector<8x32xf32>
      %509 = tpu.matmul %508, %1, %cst_138 {dimension_numbers = #tpu.dot_dimension_numbers<[1], [0], [0], [1], [0, 0, 1, 1], [], []>} : vector<8x32xbf16>, vector<32x32xbf16>, vector<8x32xf32> -> vector<8x32xf32>
      %510 = arith.addf %509, %6 : vector<8x32xf32>
      %cst_139 = arith.constant 0.000000e+00 : f32
      %511 = vector.broadcast %cst_139 : f32 to vector<8x32xf32>
      %512 = arith.maximumf %510, %511 : vector<8x32xf32>
      %513 = math.absf %510 : vector<8x32xf32>
      %cst_140 = arith.constant 0.000000e+00 : f32
      %514 = vector.broadcast %cst_140 : f32 to vector<8x32xf32>
      %515 = arith.subf %514, %513 : vector<8x32xf32>
      %516 = math.exp %515 : vector<8x32xf32>
      %517 = math.log1p %516 : vector<8x32xf32>
      %518 = arith.addf %512, %517 : vector<8x32xf32>
      %519 = arith.truncf %518 : vector<8x32xf32> to vector<8x32xbf16>
      %cst_141 = arith.constant dense<0.000000e+00> : vector<8x32xf32>
      %520 = tpu.matmul %519, %3, %cst_141 {dimension_numbers = #tpu.dot_dimension_numbers<[1], [0], [0], [1], [0, 0, 1, 1], [], []>} : vector<8x32xbf16>, vector<32x32xbf16>, vector<8x32xf32> -> vector<8x32xf32>
      %521 = arith.addf %520, %9 : vector<8x32xf32>
      %522 = arith.mulf %21, %521 : vector<8x32xf32>
      %523 = arith.addf %507, %522 : vector<8x32xf32>
      %524 = arith.truncf %523 : vector<8x32xf32> to vector<8x32xbf16>
      %cst_142 = arith.constant dense<0.000000e+00> : vector<8x32xf32>
      %525 = tpu.matmul %524, %1, %cst_142 {dimension_numbers = #tpu.dot_dimension_numbers<[1], [0], [0], [1], [0, 0, 1, 1], [], []>} : vector<8x32xbf16>, vector<32x32xbf16>, vector<8x32xf32> -> vector<8x32xf32>
      %526 = arith.addf %525, %6 : vector<8x32xf32>
      %cst_143 = arith.constant 0.000000e+00 : f32
      %527 = vector.broadcast %cst_143 : f32 to vector<8x32xf32>
      %528 = arith.maximumf %526, %527 : vector<8x32xf32>
      %529 = math.absf %526 : vector<8x32xf32>
      %cst_144 = arith.constant 0.000000e+00 : f32
      %530 = vector.broadcast %cst_144 : f32 to vector<8x32xf32>
      %531 = arith.subf %530, %529 : vector<8x32xf32>
      %532 = math.exp %531 : vector<8x32xf32>
      %533 = math.log1p %532 : vector<8x32xf32>
      %534 = arith.addf %528, %533 : vector<8x32xf32>
      %535 = arith.truncf %534 : vector<8x32xf32> to vector<8x32xbf16>
      %cst_145 = arith.constant dense<0.000000e+00> : vector<8x32xf32>
      %536 = tpu.matmul %535, %3, %cst_145 {dimension_numbers = #tpu.dot_dimension_numbers<[1], [0], [0], [1], [0, 0, 1, 1], [], []>} : vector<8x32xbf16>, vector<32x32xbf16>, vector<8x32xf32> -> vector<8x32xf32>
      %537 = arith.addf %536, %9 : vector<8x32xf32>
      %538 = arith.mulf %21, %537 : vector<8x32xf32>
      %539 = arith.addf %507, %538 : vector<8x32xf32>
      %540 = arith.truncf %539 : vector<8x32xf32> to vector<8x32xbf16>
      %cst_146 = arith.constant dense<0.000000e+00> : vector<8x32xf32>
      %541 = tpu.matmul %540, %1, %cst_146 {dimension_numbers = #tpu.dot_dimension_numbers<[1], [0], [0], [1], [0, 0, 1, 1], [], []>} : vector<8x32xbf16>, vector<32x32xbf16>, vector<8x32xf32> -> vector<8x32xf32>
      %542 = arith.addf %541, %6 : vector<8x32xf32>
      %cst_147 = arith.constant 0.000000e+00 : f32
      %543 = vector.broadcast %cst_147 : f32 to vector<8x32xf32>
      %544 = arith.maximumf %542, %543 : vector<8x32xf32>
      %545 = math.absf %542 : vector<8x32xf32>
      %cst_148 = arith.constant 0.000000e+00 : f32
      %546 = vector.broadcast %cst_148 : f32 to vector<8x32xf32>
      %547 = arith.subf %546, %545 : vector<8x32xf32>
      %548 = math.exp %547 : vector<8x32xf32>
      %549 = math.log1p %548 : vector<8x32xf32>
      %550 = arith.addf %544, %549 : vector<8x32xf32>
      %551 = arith.truncf %550 : vector<8x32xf32> to vector<8x32xbf16>
      %cst_149 = arith.constant dense<0.000000e+00> : vector<8x32xf32>
      %552 = tpu.matmul %551, %3, %cst_149 {dimension_numbers = #tpu.dot_dimension_numbers<[1], [0], [0], [1], [0, 0, 1, 1], [], []>} : vector<8x32xbf16>, vector<32x32xbf16>, vector<8x32xf32> -> vector<8x32xf32>
      %553 = arith.addf %552, %9 : vector<8x32xf32>
      %554 = arith.mulf %22, %553 : vector<8x32xf32>
      %555 = arith.addf %507, %554 : vector<8x32xf32>
      %556 = arith.truncf %555 : vector<8x32xf32> to vector<8x32xbf16>
      %cst_150 = arith.constant dense<0.000000e+00> : vector<8x32xf32>
      %557 = tpu.matmul %556, %1, %cst_150 {dimension_numbers = #tpu.dot_dimension_numbers<[1], [0], [0], [1], [0, 0, 1, 1], [], []>} : vector<8x32xbf16>, vector<32x32xbf16>, vector<8x32xf32> -> vector<8x32xf32>
      %558 = arith.addf %557, %6 : vector<8x32xf32>
      %cst_151 = arith.constant 0.000000e+00 : f32
      %559 = vector.broadcast %cst_151 : f32 to vector<8x32xf32>
      %560 = arith.maximumf %558, %559 : vector<8x32xf32>
      %561 = math.absf %558 : vector<8x32xf32>
      %cst_152 = arith.constant 0.000000e+00 : f32
      %562 = vector.broadcast %cst_152 : f32 to vector<8x32xf32>
      %563 = arith.subf %562, %561 : vector<8x32xf32>
      %564 = math.exp %563 : vector<8x32xf32>
      %565 = math.log1p %564 : vector<8x32xf32>
      %566 = arith.addf %560, %565 : vector<8x32xf32>
      %567 = arith.truncf %566 : vector<8x32xf32> to vector<8x32xbf16>
      %cst_153 = arith.constant dense<0.000000e+00> : vector<8x32xf32>
      %568 = tpu.matmul %567, %3, %cst_153 {dimension_numbers = #tpu.dot_dimension_numbers<[1], [0], [0], [1], [0, 0, 1, 1], [], []>} : vector<8x32xbf16>, vector<32x32xbf16>, vector<8x32xf32> -> vector<8x32xf32>
      %569 = arith.addf %568, %9 : vector<8x32xf32>
      %570 = arith.addf %537, %553 : vector<8x32xf32>
      %cst_154 = arith.constant 2.000000e+00 : f32
      %571 = vector.broadcast %cst_154 : f32 to vector<8x32xf32>
      %572 = arith.mulf %571, %570 : vector<8x32xf32>
      %573 = arith.addf %521, %572 : vector<8x32xf32>
      %574 = arith.addf %573, %569 : vector<8x32xf32>
      %575 = arith.mulf %24, %574 : vector<8x32xf32>
      %576 = arith.addf %507, %575 : vector<8x32xf32>
      %577 = vector.shape_cast %576 : vector<8x32xf32> to vector<1x8x32xf32>
      %578 = arith.index_cast %arg8 : i32 to index
      %c0_155 = arith.constant 0 : index
      %c0_156 = arith.constant 0 : index
      %579 = vector.load %arg7[%578, %c0_155, %c0_156] : memref<8x8x32xf32, #tpu.memory_space<vmem>>, vector<1x8x32xf32>
      tpu.vector_store %arg7[%578, %c0_155, %c0_156], %577 {strides = array<i32>} : memref<8x8x32xf32, #tpu.memory_space<vmem>>, vector<1x8x32xf32>,
      scf.yield %576, %17 : vector<8x32xf32>, f32
    }
    %c7_i32_14 = arith.constant 7 : i32
    return
  }
  func.func @transform_0(%arg0: i32) -> i32 {
    %c0_i32 = arith.constant 0 : i32
    %c0_i32_0 = arith.constant 0 : i32
    return %c0_i32 : i32
  }
  func.func @transform_1(%arg0: i32) -> (i32, i32) {
    %c0_i32 = arith.constant 0 : i32
    %c0_i32_0 = arith.constant 0 : i32
    return %arg0, %c0_i32 : i32, i32
  }
  func.func @transform_2(%arg0: i32) -> (i32, i32) {
    %c0_i32 = arith.constant 0 : i32
    %c0_i32_0 = arith.constant 0 : i32
    %c0_i32_1 = arith.constant 0 : i32
    return %c0_i32, %c0_i32_0 : i32, i32
  }
  func.func @transform_3(%arg0: i32) -> (i32, i32) {
    %c0_i32 = arith.constant 0 : i32
    %c0_i32_0 = arith.constant 0 : i32
    %c0_i32_1 = arith.constant 0 : i32
    return %c0_i32, %c0_i32_0 : i32, i32
  }
  func.func @transform_4(%arg0: i32) -> (i32, i32) {
    %c0_i32 = arith.constant 0 : i32
    %c0_i32_0 = arith.constant 0 : i32
    %c0_i32_1 = arith.constant 0 : i32
    return %c0_i32, %c0_i32_0 : i32, i32
  }
  func.func @transform_5(%arg0: i32) -> (i32, i32) {
    %c0_i32 = arith.constant 0 : i32
    %c0_i32_0 = arith.constant 0 : i32
    %c0_i32_1 = arith.constant 0 : i32
    return %c0_i32, %c0_i32_0 : i32, i32
  }
  func.func @transform_6(%arg0: i32) -> (i32, i32, i32) {
    %c0_i32 = arith.constant 0 : i32
    %c0_i32_0 = arith.constant 0 : i32
    %c0_i32_1 = arith.constant 0 : i32
    return %c0_i32, %arg0, %c0_i32_0 : i32, i32, i32
  }
}

</mosaic_0001>

<bundles_post_ra>
// kernel: tpu_custom_call.1
= control target key start
LH: loop header
LB: loop body
LE: loop exit
PB: predicated region body
PF: predicated region fallthrough
CT: control target
= control target key end

     0   :  { %11 = vsyncpa [#allocation5], 0  ;;  %s2754_s0 = inlined_call_operand.hbm [shape: f32[8], index: 0, kind: input, shape index: {}]   ;;  %s2755_s1 = inlined_call_operand.hbm [shape: f32[8,32], index: 1, kind: input, shape index: {}]   ;;  %s2756_s2 = inlined_call_operand.hbm [shape: f32[32,32], index: 2, kind: input, shape index: {}]   ;;  %s2757_s3 = inlined_call_operand.vmem [shape: f32[1,32], index: 3, kind: input, shape index: {}]   ;;  %s2758_s4 = inlined_call_operand.hbm [shape: f32[32,32], index: 4, kind: input, shape index: {}]   ;;  %s2759_s5 = inlined_call_operand.vmem [shape: f32[1,32], index: 5, kind: input, shape index: {}]   ;;  %s2760_s6 = inlined_call_operand.hbm [shape: f32[8,8,32], index: 6, kind: output, shape index: {}]  }
   0x1   :  { %12 = vsyncpa [#allocation3], 0 }
   0x2   :  { %13 = vsyncpa [#allocation8], 0  ;;  %s39_s23 = sshll.u32 %s2756_s2, 4  ;;  %s40_s23 = int_to_ptr.hbm [resolvable:$true] %s39_s23 }
   0x3   :  { %14 = vsyncpa [#allocation4], 0  ;;  %s2216_s24 = smov [#allocation7]   ;;  %s20_s28 = sshll.u32 %s2754_s0, 4  ;;  %s21_s28 = int_to_ptr.hbm [resolvable:$true] %s20_s28 }
   0x4   :  { %s41_s25 = sshll.u32 %s2216_s24, 4  ;;  %s2217_s29 = smov 128   ;;  %s42_s25 = int_to_ptr.vmem [resolvable:$true] %s41_s25 }
   0x5   :  { %s2218_s30 = smov 8   ;;  %s2219_s7 = smov [#allocation2]  }
   0x6   :  { %47 = dma.hbm_to_vmem [thread:$0]  %s40_s23, 512, %s42_s25, [#allocation8], %s2217_s29, %s2217_s29, %s2218_s30  }
   0x7   :  { %23 = dma.hbm_to_smem %s21_s28, 16, %s2219_s7, [#allocation5]  }
   0x8   :  { %s29_s9 = sshll.u32 %s2755_s1, 4  ;;  %s2220_s10 = smov [#allocation6]   ;;  %s30_s9 = int_to_ptr.hbm [resolvable:$true] %s29_s9 }
   0x9   :  { %s31_s11 = sshll.u32 %s2220_s10, 4  ;;  %s54_s0 = sshll.u32 %s2758_s4, 4  ;;  %s32_s11 = int_to_ptr.vmem [resolvable:$true] %s31_s11  ;;  %s55_s0 = int_to_ptr.hbm [resolvable:$true] %s54_s0 }
   0xa   :  { %34 = dma.hbm_to_vmem [thread:$0]  %s30_s9, 128, %s32_s11, [#allocation3]  }
   0xb   :  { %s2221_s14 = smov [#allocation9]  }
   0xc   :  { %s56_s15 = sshll.u32 %s2221_s14, 4  ;;  %s57_s15 = int_to_ptr.vmem [resolvable:$true] %s56_s15 }
   0xd   :  { %62 = dma.hbm_to_vmem [thread:$0]  %s55_s0, 512, %s57_s15, [#allocation8], %s2217_s29, %s2217_s29, %s2218_s30  }
   0xe   :  { %2196 = dma.done.wait [#allocation5], 16  }
   0xf   :  { %2197 = vsyncadd [#allocation5], 4294967280 }
  0x10   :  { %2198 = dma.done.wait [#allocation3], 128  }
  0x11   :  { %2199 = vsyncadd [#allocation3], 4294967168 }
  0x12   :  { %2200 = dma.done.wait [#allocation8], 1024  }
  0x13   :  { %2201 = vsyncadd [#allocation8], 4294966272 }
  0x14   :  { %81 = sfence }
  0x15   :  { %v83_v0 = vld [vmem:[#allocation7] sm:$0xff]  ;;  %v84_v1 = vld [vmem:[#allocation7 + $0x8] sm:$0xff]  ;;  %v85_v2 = vld [vmem:[#allocation7 + $0x10] sm:$0xff]  ;;  %s106_s1 = sld [smem:[#allocation2]]   ;;  %vm104_vm0 = vcmask 261120   ;;  %s2301_s19 = smov 1  }
  0x16   :  { %v86_v3 = vld [vmem:[#allocation7 + $0x18] sm:$0xff]  ;;  %v2278_v4 = vpack.c.bf16 %v84_v1, %v83_v0  ;;  %v89_v5 = vld [vmem:[#allocation9] sm:$0xff]  ;;  %v90_v6 = vld [vmem:[#allocation9 + $0x8] sm:$0xff] }
  0x17   :  { %v2280_v7 = vpack.c.bf16 %v86_v3, %v85_v2  ;;  %v91_v8 = vld [vmem:[#allocation9 + $0x10] sm:$0xff]  ;;  %v92_v9 = vld [vmem:[#allocation9 + $0x18] sm:$0xff]  ;;  %v2282_v10 = vpack.c.bf16 %v90_v6, %v89_v5 }
  0x18   :  { %v2284_v11 = vpack.c.bf16 %v92_v9, %v91_v8  ;;  %v2289_v12 = vld [vmem:[%s2757_s3] ss:$0 sm:$0xff] }
  0x19   :  { %v2294_v13 = vld [vmem:[%s2759_s5] ss:$0 sm:$0xff] }
  0x1a   :  { %v103_v14 = vld [vmem:[#allocation6] sm:$0xff]  }
  0x1b   :  { %105 = vst.msk [vmem:[#allocation10] sm:$0xff] %vm104_vm0, %v103_v14 }
  0x1c LB: > { %149 = vmatpush.bf16.msra.mxu0 %v2280_v7  ;;  %181 = vmatpush.bf16.msra.mxu1 %v2284_v11  ;;  %v139_v15 = vpack.c.bf16 %v2210_v14, %v2210_v14  ;;  %v2222_v18 = vmov 8.0   ;;  %v2223_v19 = vmov 6.0   ;;  %s2338_s3 = sld [smem:[#allocation2 + %s2214_s19]]   ;;  %s1904_s25 = sshll.u32 %s2214_s19, 3  ;;  %s2214_s19 = sphi %s2301_s19, %s112_s19   ;;  %v2210_v14 = vphi %v103_v14, %v1802_v14   ;;  %s2206_s1 = sphi %s106_s1, %s2761_s1  }
  0x1d   : > { %200 = vmatpush.bf16.msra.mxu2 %v2280_v7  ;;  %232 = vmatpush.bf16.msra.mxu3 %v2284_v11  ;;  %1944 = vrcp.f32 %v2222_v18  ;;  %s1804_s26 = scalar_lea.vmem [#allocation10], %s1904_s25  ;;  %s112_s19 = sadd.s32 1, %s2214_s19  }
  0x1e   : > { %1946 = vrcp.f32 %v2223_v19  ;;  %p109_p0 = scmp.ge.s32.totalorder %s112_s19, 8  }
  0x1f   :  { %s1812_s7 = sshll.u32 (%p109_p0), %s2760_s6, 4  ;;  %s2224_s8 = smov (%p109_p0), [#allocation10]   ;;  %s1813_s7 = int_to_ptr.hbm [resolvable:$true] %s1812_s7 }
  0x20   : > { %150 = vmatpush.bf16.msra.mxu0 %v2278_v4  ;;  %182 = vmatpush.bf16.msra.mxu1 %v2282_v10  ;;  %s1810_s2 = sshll.u32 (%p109_p0), %s2224_s8, 4  ;;  %s1811_s2 = int_to_ptr.vmem [resolvable:$true] %s1810_s2 }
  0x21   : > { %201 = vmatpush.bf16.msra.mxu2 %v2278_v4  ;;  %233 = vmatpush.bf16.msra.mxu3 %v2282_v10 }
  0x22   : > { %s116_s5 = ssub.f32 %s2338_s3, %s2206_s1  ;;  %s2761_s1 = smov %s2338_s3 }
  0x23   : > { %1840 = vmatmul.msk.bf16.vlgmr.msra.gmra.mxu0 %vm104_vm0, %v139_v15  ;;  %v1945_v22 = vpop.eup %1944 }
  0x24   : > { %251 = vmatpush.bf16.msrb.mxu0 %v2280_v7  ;;  %283 = vmatpush.bf16.msrb.mxu1 %v2284_v11  ;;  %v1947_v24 = vpop.eup %1946  ;;  %v118_v26 = vmul.f32 8.0, %v1945_v22  ;;  %vm122_vm1 = vweird.f32 %v1945_v22 }
  0x25   : > { %302 = vmatpush.bf16.msrb.mxu2 %v2280_v7  ;;  %334 = vmatpush.bf16.msrb.mxu3 %v2284_v11  ;;  %v130_v27 = vmul.f32 6.0, %v1947_v24  ;;  %vm134_vm2 = vweird.f32 %v1947_v24 }
  0x26   : > { %v119_v28 = vsub.f32 1.0, %v118_v26 }
  0x27   : > { %v131_v29 = vsub.f32 1.0, %v130_v27 }
  0x28   : > { %252 = vmatpush.bf16.msrb.mxu0 %v2278_v4  ;;  %284 = vmatpush.bf16.msrb.mxu1 %v2282_v10  ;;  %v120_v30 = vmul.f32 %v1945_v22, %v119_v28 }
  0x29   : > { %303 = vmatpush.bf16.msrb.mxu2 %v2278_v4  ;;  %335 = vmatpush.bf16.msrb.mxu3 %v2282_v10  ;;  %v132_v31 = vmul.f32 %v1947_v24, %v131_v29 }
  0x2a   : > { %v121_v32 = vadd.f32 %v1945_v22, %v120_v30 }
  0x2b   : > { %v133_v34 = vadd.f32 %v1947_v24, %v132_v31 }
  0x2c   : > { %357 = vmatpush.bf16.msra.mxu0 %v2280_v7  ;;  %v123_v36 = vsel %vm122_vm1, %v1945_v22, %v121_v32 }
  0x2d   : > { %1905 = vpush %v123_v36  ;;  %v135_v38 = vsel %vm134_vm2, %v1947_v24, %v133_v34 }
  0x2e   : > { %1907 = vpush %v135_v38 }
  0x30   : > { %358 = vmatpush.bf16.msra.mxu0 %v2278_v4 }
  0x5e   : > { %s1906_s20 = spop %1905 }
  0x5f   : > { %s2342_s21 = smul.f32 %s1906_s20, %s116_s5  ;;  %s1908_s23 = spop %1907 }
  0x61   : > { %s126_s22 = smul.f32 0.5, %s2342_s21 }
  0x62   : > { %s137_s24 = smul.f32 %s1908_s23, %s2342_s21 }
  0x63   : > { %v2345_v48 = vstv %s126_s22 }
  0xa0   : > { %v152_v16 = vpop.f32.mrf.mxu0 }
  0xa1   : > { %v153_v17 = vadd.f32 %v2289_v12, %v152_v16 }
  0xa3   : > { %v157_v20 = vand.u32 2147483647, %v153_v17  ;;  %v156_v44 = vmax.f32 %v153_v17, 0.0 }
  0xa5   : > { %v158_v21 = vsub.f32 0.0, %v157_v20 }
  0xa7   : > { %v159_v23 = vmul.f32 1.442695, %v158_v21 }
  0xa8   : > { %v154_v25 = vpop.f32.mrf.mxu0 }
  0xa9   : > { %1948 = vpow2.f32 %v159_v23 }
  0xaf   : > { %v1949_v33 = vpop.eup %1948 }
  0xb0   : > { %v161_v35 = vadd.f32 1.0, %v1949_v33  ;;  %v164_v37 = vmul.f32 -0.5, %v1949_v33  ;;  %v167_v40 = vand.u32 2147483647, %v1949_v33 }
  0xb2   : > { %1950 = vlog2.f32 %v161_v35  ;;  %v165_v39 = vadd.f32 1.0, %v164_v37  ;;  %vm168_vm3 = vcmp.lt.f32.partialorder %v167_v40, 0.0004427343 }
  0xb4   : > { %v166_v43 = vmul.f32 %v1949_v33, %v165_v39 }
  0xb8   : > { %v1951_v41 = vpop.eup %1950 }
  0xb9   : > { %v163_v42 = vmul.f32 0.6931472, %v1951_v41 }
  0xbb   : > { %v169_v45 = vsel %vm168_vm3, %v166_v43, %v163_v42  ;;  %v2375_v42 = vstv %s2342_s21 }
  0xbc   : > { %v170_v46 = vadd.f32 %v169_v45, %v156_v44 }
  0xbe   : > { %v171_v47 = vpack.c.bf16 %v170_v46, %v170_v46 }
  0xc0   : > { %1841 = vmatmul.msk.bf16.vlgmr.msra.gmra.mxu1 %vm104_vm0, %v171_v47 }
  0xc1   : > { %389 = vmatpush.bf16.msra.mxu1 %v2284_v11 }
  0xc5   : > { %390 = vmatpush.bf16.msra.mxu1 %v2282_v10 }
 0x13d   : > { %v184_v49 = vpop.f32.mrf.mxu1 }
 0x13e   : > { %v2348_v50 = vadd.f32 %v2294_v13, %v184_v49 }
 0x140   : > { %v188_v51 = vmul.f32 %v2348_v50, %v2345_v48 }
 0x142   : > { %v189_v52 = vadd.f32 %v2210_v14, %v188_v51 }
 0x144   : > { %v190_v53 = vpack.c.bf16 %v189_v52, %v189_v52 }
 0x145   : > { %v186_v54 = vpop.f32.mrf.mxu1 }
 0x146   : > { %1842 = vmatmul.msk.bf16.vlgmr.msra.gmra.mxu2 %vm104_vm0, %v190_v53 }
 0x147   : > { %408 = vmatpush.bf16.msra.mxu2 %v2280_v7 }
 0x14b   : > { %409 = vmatpush.bf16.msra.mxu2 %v2278_v4 }
 0x1c9   : > { %v203_v55 = vpop.f32.mrf.mxu2 }
 0x1ca   : > { %v204_v56 = vadd.f32 %v2289_v12, %v203_v55 }
 0x1cc   : > { %v208_v57 = vand.u32 2147483647, %v204_v56  ;;  %v207_v6 = vmax.f32 %v204_v56, 0.0 }
 0x1ce   : > { %v209_v58 = vsub.f32 0.0, %v208_v57 }
 0x1d0   : > { %v210_v59 = vmul.f32 1.442695, %v209_v58 }
 0x1d1   : > { %v205_v60 = vpop.f32.mrf.mxu2 }
 0x1d2   : > { %1952 = vpow2.f32 %v210_v59 }
 0x1d8   : > { %v1953_v61 = vpop.eup %1952 }
 0x1d9   : > { %v212_v62 = vadd.f32 1.0, %v1953_v61  ;;  %v215_v63 = vmul.f32 -0.5, %v1953_v61  ;;  %v218_v1 = vand.u32 2147483647, %v1953_v61 }
 0x1db   : > { %1954 = vlog2.f32 %v212_v62  ;;  %v216_v0 = vadd.f32 1.0, %v215_v63  ;;  %vm219_vm4 = vcmp.lt.f32.partialorder %v218_v1, 0.0004427343 }
 0x1dd   : > { %v217_v5 = vmul.f32 %v1953_v61, %v216_v0 }
 0x1e1   : > { %v1955_v2 = vpop.eup %1954 }
 0x1e2   : > { %v214_v3 = vmul.f32 0.6931472, %v1955_v2 }
 0x1e4   : > { %v220_v8 = vsel %vm219_vm4, %v217_v5, %v214_v3 }
 0x1e5   : > { %v221_v9 = vadd.f32 %v220_v8, %v207_v6 }
 0x1e7   : > { %v222_v15 = vpack.c.bf16 %v221_v9, %v221_v9 }
 0x1e9   : > { %1843 = vmatmul.msk.bf16.vlgmr.msra.gmra.mxu3 %vm104_vm0, %v222_v15 }
 0x1ea   : > { %440 = vmatpush.bf16.msra.mxu3 %v2284_v11 }
 0x1ee   : > { %441 = vmatpush.bf16.msra.mxu3 %v2282_v10 }
 0x26c   : > { %v235_v16 = vpop.f32.mrf.mxu3 }
 0x26d   : > { %v2361_v17 = vadd.f32 %v2294_v13, %v235_v16  ;;  %v2390_v16 = vstv %s137_s24 }
 0x26f   : > { %v239_v18 = vmul.f32 %v2361_v17, %v2345_v48 }
 0x271   : > { %v240_v19 = vadd.f32 %v2210_v14, %v239_v18 }
 0x273   : > { %v241_v20 = vpack.c.bf16 %v240_v19, %v240_v19 }
 0x274   : > { %v237_v21 = vpop.f32.mrf.mxu3 }
 0x275   : > { %1844 = vmatmul.msk.bf16.vlgmr.msrb.gmra.mxu0 %vm104_vm0, %v241_v20 }
 0x276   : > { %459 = vmatpush.bf16.msrb.mxu0 %v2280_v7 }
 0x27a   : > { %460 = vmatpush.bf16.msrb.mxu0 %v2278_v4 }
 0x2f2   : > { %v254_v22 = vpop.f32.mrf.mxu0 }
 0x2f3   : > { %v255_v23 = vadd.f32 %v2289_v12, %v254_v22 }
 0x2f5   : > { %v259_v24 = vand.u32 2147483647, %v255_v23  ;;  %v258_v36 = vmax.f32 %v255_v23, 0.0 }
 0x2f7   : > { %v260_v25 = vsub.f32 0.0, %v259_v24 }
 0x2f9   : > { %v261_v26 = vmul.f32 1.442695, %v260_v25 }
 0x2fa   : > { %v256_v27 = vpop.f32.mrf.mxu0 }
 0x2fb   : > { %1956 = vpow2.f32 %v261_v26 }
 0x301   : > { %v1957_v28 = vpop.eup %1956 }
 0x302   : > { %v263_v29 = vadd.f32 1.0, %v1957_v28  ;;  %v266_v30 = vmul.f32 -0.5, %v1957_v28  ;;  %v269_v32 = vand.u32 2147483647, %v1957_v28 }
 0x304   : > { %1958 = vlog2.f32 %v263_v29  ;;  %v267_v31 = vadd.f32 1.0, %v266_v30  ;;  %vm270_vm5 = vcmp.lt.f32.partialorder %v269_v32, 0.0004427343 }
 0x306   : > { %v268_v35 = vmul.f32 %v1957_v28, %v267_v31 }
 0x30a   : > { %v1959_v33 = vpop.eup %1958 }
 0x30b   : > { %v265_v34 = vmul.f32 0.6931472, %v1959_v33 }
 0x30d   : > { %v271_v37 = vsel %vm270_vm5, %v268_v35, %v265_v34 }
 0x30e   : > { %v272_v38 = vadd.f32 %v271_v37, %v258_v36 }
 0x310   : > { %v273_v39 = vpack.c.bf16 %v272_v38, %v272_v38 }
 0x312   : > { %1845 = vmatmul.msk.bf16.vlgmr.msrb.gmra.mxu1 %vm104_vm0, %v273_v39 }
 0x313   : > { %491 = vmatpush.bf16.msrb.mxu1 %v2284_v11 }
 0x317   : > { %492 = vmatpush.bf16.msrb.mxu1 %v2282_v10 }
 0x38f   : > { %v286_v40 = vpop.f32.mrf.mxu1 }
 0x390   : > { %v287_v41 = vadd.f32 %v2294_v13, %v286_v40 }
 0x392   : > { %v290_v43 = vmul.f32 %v287_v41, %v2375_v42  ;;  %v341_v3 = vadd.f32 %v287_v41, %v2361_v17 }
 0x394   : > { %v291_v44 = vadd.f32 %v2210_v14, %v290_v43  ;;  %v342_v5 = vmul.f32 2.0, %v341_v3 }
 0x396   : > { %v292_v45 = vpack.c.bf16 %v291_v44, %v291_v44  ;;  %v343_v9 = vadd.f32 %v342_v5, %v2348_v50 }
 0x397   : > { %v288_v46 = vpop.f32.mrf.mxu1 }
 0x398   : > { %1846 = vmatmul.msk.bf16.vlgmr.msrb.gmra.mxu2 %vm104_vm0, %v292_v45 }
 0x399   : > { %510 = vmatpush.bf16.msrb.mxu2 %v2280_v7 }
 0x39d   : > { %511 = vmatpush.bf16.msrb.mxu2 %v2278_v4 }
 0x41b   : > { %v305_v47 = vpop.f32.mrf.mxu2 }
 0x41c   : > { %v306_v49 = vadd.f32 %v2289_v12, %v305_v47 }
 0x41e   : > { %v310_v51 = vand.u32 2147483647, %v306_v49  ;;  %v309_v63 = vmax.f32 %v306_v49, 0.0 }
 0x420   : > { %v311_v52 = vsub.f32 0.0, %v310_v51 }
 0x422   : > { %v312_v53 = vmul.f32 1.442695, %v311_v52 }
 0x423   : > { %v307_v54 = vpop.f32.mrf.mxu2 }
 0x424   : > { %1960 = vpow2.f32 %v312_v53 }
 0x42a   : > { %v1961_v55 = vpop.eup %1960 }
 0x42b   : > { %v314_v56 = vadd.f32 1.0, %v1961_v55  ;;  %v317_v57 = vmul.f32 -0.5, %v1961_v55  ;;  %v320_v59 = vand.u32 2147483647, %v1961_v55 }
 0x42d   : > { %1962 = vlog2.f32 %v314_v56  ;;  %v318_v58 = vadd.f32 1.0, %v317_v57  ;;  %vm321_vm6 = vcmp.lt.f32.partialorder %v320_v59, 0.0004427343 }
 0x42f   : > { %v319_v62 = vmul.f32 %v1961_v55, %v318_v58 }
 0x433   : > { %v1963_v60 = vpop.eup %1962 }
 0x434   : > { %v316_v61 = vmul.f32 0.6931472, %v1963_v60 }
 0x436   : > { %v322_v0 = vsel %vm321_vm6, %v319_v62, %v316_v61 }
 0x437   : > { %v323_v1 = vadd.f32 %v322_v0, %v309_v63 }
 0x439   : > { %v324_v2 = vpack.c.bf16 %v323_v1, %v323_v1 }
 0x43b   : > { %1847 = vmatmul.msk.bf16.vlgmr.msrb.gmra.mxu3 %vm104_vm0, %v324_v2 }
 0x43c   : > { %542 = vmatpush.bf16.msrb.mxu3 %v2284_v11 }
 0x440   : > { %543 = vmatpush.bf16.msrb.mxu3 %v2282_v10 }
 0x4be   : > { %v337_v6 = vpop.f32.mrf.mxu3 }
 0x4bf   : > { %v338_v8 = vadd.f32 %v2294_v13, %v337_v6 }
 0x4c1   : > { %v344_v15 = vadd.f32 %v343_v9, %v338_v8 }
 0x4c3   : > { %v345_v18 = vmul.f32 %v344_v15, %v2390_v16 }
 0x4c5   : > { %v2394_v19 = vadd.f32 %v2210_v14, %v345_v18 }
 0x4c6   : > { %v339_v20 = vpop.f32.mrf.mxu3 }
 0x4c7   : > { %v347_v17 = vpack.c.bf16 %v2394_v19, %v2394_v19 }
 0x4c9   : > { %1848 = vmatmul.msk.bf16.vlgmr.msra.gmra.mxu0 %vm104_vm0, %v347_v17 }
 0x4ca   : > { %565 = vmatpush.bf16.msra.mxu0 %v2280_v7 }
 0x4ce   : > { %566 = vmatpush.bf16.msra.mxu0 %v2278_v4 }
 0x546   : > { %v360_v21 = vpop.f32.mrf.mxu0 }
 0x547   : > { %v361_v50 = vadd.f32 %v2289_v12, %v360_v21 }
 0x549   : > { %v365_v22 = vand.u32 2147483647, %v361_v50  ;;  %v364_v33 = vmax.f32 %v361_v50, 0.0 }
 0x54b   : > { %v366_v23 = vsub.f32 0.0, %v365_v22 }
 0x54d   : > { %v367_v24 = vmul.f32 1.442695, %v366_v23 }
 0x54e   : > { %v362_v25 = vpop.f32.mrf.mxu0 }
 0x54f   : > { %1964 = vpow2.f32 %v367_v24 }
 0x555   : > { %v1965_v14 = vpop.eup %1964 }
 0x556   : > { %v369_v26 = vadd.f32 1.0, %v1965_v14  ;;  %v372_v27 = vmul.f32 -0.5, %v1965_v14  ;;  %v375_v29 = vand.u32 2147483647, %v1965_v14 }
 0x558   : > { %1966 = vlog2.f32 %v369_v26  ;;  %v373_v28 = vadd.f32 1.0, %v372_v27  ;;  %vm376_vm7 = vcmp.lt.f32.partialorder %v375_v29, 0.0004427343 }
 0x55a   : > { %v374_v32 = vmul.f32 %v1965_v14, %v373_v28 }
 0x55e   : > { %v1967_v30 = vpop.eup %1966 }
 0x55f   : > { %v371_v31 = vmul.f32 0.6931472, %v1967_v30 }
 0x561   : > { %v377_v34 = vsel %vm376_vm7, %v374_v32, %v371_v31 }
 0x562   : > { %v378_v35 = vadd.f32 %v377_v34, %v364_v33 }
 0x564   : > { %v379_v36 = vpack.c.bf16 %v378_v35, %v378_v35 }
 0x566   : > { %1849 = vmatmul.msk.bf16.vlgmr.msra.gmra.mxu1 %vm104_vm0, %v379_v36 }
 0x567   : > { %597 = vmatpush.bf16.msra.mxu1 %v2284_v11 }
 0x56b   : > { %598 = vmatpush.bf16.msra.mxu1 %v2282_v10 }
 0x5e3   : > { %v392_v37 = vpop.f32.mrf.mxu1 }
 0x5e4   : > { %v2406_v38 = vadd.f32 %v2294_v13, %v392_v37 }
 0x5e6   : > { %v396_v39 = vmul.f32 %v2406_v38, %v2345_v48 }
 0x5e8   : > { %v397_v40 = vadd.f32 %v396_v39, %v2394_v19 }
 0x5ea   : > { %v398_v41 = vpack.c.bf16 %v397_v40, %v397_v40 }
 0x5eb   : > { %v394_v43 = vpop.f32.mrf.mxu1 }
 0x5ec   : > { %1850 = vmatmul.msk.bf16.vlgmr.msra.gmra.mxu2 %vm104_vm0, %v398_v41 }
 0x5ed   : > { %616 = vmatpush.bf16.msra.mxu2 %v2280_v7 }
 0x5f1   : > { %617 = vmatpush.bf16.msra.mxu2 %v2278_v4 }
 0x66f   : > { %v411_v44 = vpop.f32.mrf.mxu2 }
 0x670   : > { %v412_v45 = vadd.f32 %v2289_v12, %v411_v44 }
 0x672   : > { %v416_v46 = vand.u32 2147483647, %v412_v45  ;;  %v415_v60 = vmax.f32 %v412_v45, 0.0 }
 0x674   : > { %v417_v47 = vsub.f32 0.0, %v416_v46 }
 0x676   : > { %v418_v49 = vmul.f32 1.442695, %v417_v47 }
 0x677   : > { %v413_v51 = vpop.f32.mrf.mxu2 }
 0x678   : > { %1968 = vpow2.f32 %v418_v49 }
 0x67e   : > { %v1969_v52 = vpop.eup %1968 }
 0x67f   : > { %v420_v53 = vadd.f32 1.0, %v1969_v52  ;;  %v423_v54 = vmul.f32 -0.5, %v1969_v52  ;;  %v426_v56 = vand.u32 2147483647, %v1969_v52 }
 0x681   : > { %1970 = vlog2.f32 %v420_v53  ;;  %v424_v55 = vadd.f32 1.0, %v423_v54  ;;  %vm427_vm8 = vcmp.lt.f32.partialorder %v426_v56, 0.0004427343 }
 0x683   : > { %v425_v59 = vmul.f32 %v1969_v52, %v424_v55 }
 0x687   : > { %v1971_v57 = vpop.eup %1970 }
 0x688   : > { %v422_v58 = vmul.f32 0.6931472, %v1971_v57 }
 0x68a   : > { %v428_v61 = vsel %vm427_vm8, %v425_v59, %v422_v58 }
 0x68b   : > { %v429_v62 = vadd.f32 %v428_v61, %v415_v60 }
 0x68d   : > { %v430_v63 = vpack.c.bf16 %v429_v62, %v429_v62 }
 0x68f   : > { %1851 = vmatmul.msk.bf16.vlgmr.msra.gmra.mxu3 %vm104_vm0, %v430_v63 }
 0x690   : > { %648 = vmatpush.bf16.msra.mxu3 %v2284_v11 }
 0x694   : > { %649 = vmatpush.bf16.msra.mxu3 %v2282_v10 }
 0x712   : > { %v443_v0 = vpop.f32.mrf.mxu3 }
 0x713   : > { %v2419_v1 = vadd.f32 %v2294_v13, %v443_v0 }
 0x715   : > { %v447_v2 = vmul.f32 %v2419_v1, %v2345_v48 }
 0x717   : > { %v448_v3 = vadd.f32 %v447_v2, %v2394_v19 }
 0x719   : > { %v449_v5 = vpack.c.bf16 %v448_v3, %v448_v3 }
 0x71a   : > { %v445_v6 = vpop.f32.mrf.mxu3 }
 0x71b   : > { %1852 = vmatmul.msk.bf16.vlgmr.msrb.gmra.mxu0 %vm104_vm0, %v449_v5 }
 0x71c   : > { %667 = vmatpush.bf16.msrb.mxu0 %v2280_v7 }
 0x720   : > { %668 = vmatpush.bf16.msrb.mxu0 %v2278_v4 }
 0x798   : > { %v462_v8 = vpop.f32.mrf.mxu0 }
 0x799   : > { %v463_v9 = vadd.f32 %v2289_v12, %v462_v8 }
 0x79b   : > { %v467_v15 = vand.u32 2147483647, %v463_v9  ;;  %v466_v27 = vmax.f32 %v463_v9, 0.0 }
 0x79d   : > { %v468_v18 = vsub.f32 0.0, %v467_v15 }
 0x79f   : > { %v469_v20 = vmul.f32 1.442695, %v468_v18 }
 0x7a0   : > { %v464_v17 = vpop.f32.mrf.mxu0 }
 0x7a1   : > { %1972 = vpow2.f32 %v469_v20 }
 0x7a7   : > { %v1973_v21 = vpop.eup %1972 }
 0x7a8   : > { %v471_v50 = vadd.f32 1.0, %v1973_v21  ;;  %v474_v22 = vmul.f32 -0.5, %v1973_v21  ;;  %v477_v24 = vand.u32 2147483647, %v1973_v21 }
 0x7aa   : > { %1974 = vlog2.f32 %v471_v50  ;;  %v475_v23 = vadd.f32 1.0, %v474_v22  ;;  %vm478_vm9 = vcmp.lt.f32.partialorder %v477_v24, 0.0004427343 }
 0x7ac   : > { %v476_v26 = vmul.f32 %v1973_v21, %v475_v23 }
 0x7b0   : > { %v1975_v25 = vpop.eup %1974 }
 0x7b1   : > { %v473_v14 = vmul.f32 0.6931472, %v1975_v25 }
 0x7b3   : > { %v479_v28 = vsel %vm478_vm9, %v476_v26, %v473_v14 }
 0x7b4   : > { %v480_v29 = vadd.f32 %v479_v28, %v466_v27 }
 0x7b6   : > { %v481_v30 = vpack.c.bf16 %v480_v29, %v480_v29 }
 0x7b8   : > { %1853 = vmatmul.msk.bf16.vlgmr.msrb.gmra.mxu1 %vm104_vm0, %v481_v30 }
 0x7b9   : > { %699 = vmatpush.bf16.msrb.mxu1 %v2284_v11 }
 0x7bd   : > { %700 = vmatpush.bf16.msrb.mxu1 %v2282_v10 }
 0x835   : > { %v494_v31 = vpop.f32.mrf.mxu1 }
 0x836   : > { %v495_v32 = vadd.f32 %v2294_v13, %v494_v31 }
 0x838   : > { %v498_v33 = vmul.f32 %v495_v32, %v2375_v42  ;;  %v549_v59 = vadd.f32 %v495_v32, %v2419_v1 }
 0x83a   : > { %v499_v34 = vadd.f32 %v498_v33, %v2394_v19  ;;  %v550_v60 = vmul.f32 2.0, %v549_v59 }
 0x83c   : > { %v500_v35 = vpack.c.bf16 %v499_v34, %v499_v34  ;;  %v551_v63 = vadd.f32 %v550_v60, %v2406_v38 }
 0x83d   : > { %v496_v36 = vpop.f32.mrf.mxu1 }
 0x83e   : > { %1854 = vmatmul.msk.bf16.vlgmr.msrb.gmra.mxu2 %vm104_vm0, %v500_v35 }
 0x83f   : > { %718 = vmatpush.bf16.msrb.mxu2 %v2280_v7 }
 0x843   : > { %719 = vmatpush.bf16.msrb.mxu2 %v2278_v4 }
 0x8c1   : > { %v513_v37 = vpop.f32.mrf.mxu2 }
 0x8c2   : > { %v514_v39 = vadd.f32 %v2289_v12, %v513_v37 }
 0x8c4   : > { %v518_v40 = vand.u32 2147483647, %v514_v39  ;;  %v517_v55 = vmax.f32 %v514_v39, 0.0 }
 0x8c6   : > { %v519_v41 = vsub.f32 0.0, %v518_v40 }
 0x8c8   : > { %v520_v43 = vmul.f32 1.442695, %v519_v41 }
 0x8c9   : > { %v515_v44 = vpop.f32.mrf.mxu2 }
 0x8ca   : > { %1976 = vpow2.f32 %v520_v43 }
 0x8d0   : > { %v1977_v45 = vpop.eup %1976 }
 0x8d1   : > { %v522_v46 = vadd.f32 1.0, %v1977_v45  ;;  %v525_v47 = vmul.f32 -0.5, %v1977_v45  ;;  %v528_v51 = vand.u32 2147483647, %v1977_v45 }
 0x8d3   : > { %1978 = vlog2.f32 %v522_v46  ;;  %v526_v49 = vadd.f32 1.0, %v525_v47  ;;  %vm529_vm10 = vcmp.lt.f32.partialorder %v528_v51, 0.0004427343 }
 0x8d5   : > { %v527_v54 = vmul.f32 %v1977_v45, %v526_v49 }
 0x8d9   : > { %v1979_v52 = vpop.eup %1978 }
 0x8da   : > { %v524_v53 = vmul.f32 0.6931472, %v1979_v52 }
 0x8dc   : > { %v530_v56 = vsel %vm529_vm10, %v527_v54, %v524_v53 }
 0x8dd   : > { %v531_v57 = vadd.f32 %v530_v56, %v517_v55 }
 0x8df   : > { %v532_v58 = vpack.c.bf16 %v531_v57, %v531_v57 }
 0x8e1   : > { %1855 = vmatmul.msk.bf16.vlgmr.msrb.gmra.mxu3 %vm104_vm0, %v532_v58 }
 0x8e2   : > { %750 = vmatpush.bf16.msrb.mxu3 %v2284_v11 }
 0x8e6   : > { %751 = vmatpush.bf16.msrb.mxu3 %v2282_v10 }
 0x964   : > { %v545_v61 = vpop.f32.mrf.mxu3 }
 0x965   : > { %v546_v62 = vadd.f32 %v2294_v13, %v545_v61 }
 0x967   : > { %v552_v0 = vadd.f32 %v551_v63, %v546_v62 }
 0x969   : > { %v553_v2 = vmul.f32 %v552_v0, %v2390_v16 }
 0x96b   : > { %v2446_v3 = vadd.f32 %v553_v2, %v2394_v19 }
 0x96c   : > { %v547_v5 = vpop.f32.mrf.mxu3 }
 0x96d   : > { %v555_v6 = vpack.c.bf16 %v2446_v3, %v2446_v3 }
 0x96f   : > { %1856 = vmatmul.msk.bf16.vlgmr.msra.gmra.mxu0 %vm104_vm0, %v555_v6 }
 0x970   : > { %773 = vmatpush.bf16.msra.mxu0 %v2280_v7 }
 0x974   : > { %774 = vmatpush.bf16.msra.mxu0 %v2278_v4 }
 0x9ec   : > { %v568_v1 = vpop.f32.mrf.mxu0 }
 0x9ed   : > { %v569_v8 = vadd.f32 %v2289_v12, %v568_v1 }
 0x9ef   : > { %v573_v38 = vand.u32 2147483647, %v569_v8  ;;  %v572_v25 = vmax.f32 %v569_v8, 0.0 }
 0x9f1   : > { %v574_v9 = vsub.f32 0.0, %v573_v38 }
 0x9f3   : > { %v575_v15 = vmul.f32 1.442695, %v574_v9 }
 0x9f4   : > { %v570_v18 = vpop.f32.mrf.mxu0 }
 0x9f5   : > { %1980 = vpow2.f32 %v575_v15 }
 0x9fb   : > { %v1981_v19 = vpop.eup %1980 }
 0x9fc   : > { %v577_v20 = vadd.f32 1.0, %v1981_v19  ;;  %v580_v17 = vmul.f32 -0.5, %v1981_v19  ;;  %v583_v50 = vand.u32 2147483647, %v1981_v19 }
 0x9fe   : > { %1982 = vlog2.f32 %v577_v20  ;;  %v581_v21 = vadd.f32 1.0, %v580_v17  ;;  %vm584_vm11 = vcmp.lt.f32.partialorder %v583_v50, 0.0004427343 }
 0xa00   : > { %v582_v24 = vmul.f32 %v1981_v19, %v581_v21 }
 0xa04   : > { %v1983_v22 = vpop.eup %1982 }
 0xa05   : > { %v579_v23 = vmul.f32 0.6931472, %v1983_v22 }
 0xa07   : > { %v585_v14 = vsel %vm584_vm11, %v582_v24, %v579_v23 }
 0xa08   : > { %v586_v26 = vadd.f32 %v585_v14, %v572_v25 }
 0xa0a   : > { %v587_v27 = vpack.c.bf16 %v586_v26, %v586_v26 }
 0xa0c   : > { %1857 = vmatmul.msk.bf16.vlgmr.msra.gmra.mxu1 %vm104_vm0, %v587_v27 }
 0xa0d   : > { %805 = vmatpush.bf16.msra.mxu1 %v2284_v11 }
 0xa11   : > { %806 = vmatpush.bf16.msra.mxu1 %v2282_v10 }
 0xa89   : > { %v600_v28 = vpop.f32.mrf.mxu1 }
 0xa8a   : > { %v2458_v29 = vadd.f32 %v2294_v13, %v600_v28 }
 0xa8c   : > { %v604_v30 = vmul.f32 %v2458_v29, %v2345_v48 }
 0xa8e   : > { %v605_v31 = vadd.f32 %v604_v30, %v2446_v3 }
 0xa90   : > { %v606_v32 = vpack.c.bf16 %v605_v31, %v605_v31 }
 0xa91   : > { %v602_v33 = vpop.f32.mrf.mxu1 }
 0xa92   : > { %1858 = vmatmul.msk.bf16.vlgmr.msra.gmra.mxu2 %vm104_vm0, %v606_v32 }
 0xa93   : > { %824 = vmatpush.bf16.msra.mxu2 %v2280_v7 }
 0xa97   : > { %825 = vmatpush.bf16.msra.mxu2 %v2278_v4 }
 0xb15   : > { %v619_v34 = vpop.f32.mrf.mxu2 }
 0xb16   : > { %v620_v35 = vadd.f32 %v2289_v12, %v619_v34 }
 0xb18   : > { %v624_v36 = vand.u32 2147483647, %v620_v35  ;;  %v623_v52 = vmax.f32 %v620_v35, 0.0 }
 0xb1a   : > { %v625_v37 = vsub.f32 0.0, %v624_v36 }
 0xb1c   : > { %v626_v39 = vmul.f32 1.442695, %v625_v37 }
 0xb1d   : > { %v621_v40 = vpop.f32.mrf.mxu2 }
 0xb1e   : > { %1984 = vpow2.f32 %v626_v39 }
 0xb24   : > { %v1985_v41 = vpop.eup %1984 }
 0xb25   : > { %v628_v43 = vadd.f32 1.0, %v1985_v41  ;;  %v631_v44 = vmul.f32 -0.5, %v1985_v41  ;;  %v634_v46 = vand.u32 2147483647, %v1985_v41 }
 0xb27   : > { %1986 = vlog2.f32 %v628_v43  ;;  %v632_v45 = vadd.f32 1.0, %v631_v44  ;;  %vm635_vm12 = vcmp.lt.f32.partialorder %v634_v46, 0.0004427343 }
 0xb29   : > { %v633_v51 = vmul.f32 %v1985_v41, %v632_v45 }
 0xb2d   : > { %v1987_v47 = vpop.eup %1986 }
 0xb2e   : > { %v630_v49 = vmul.f32 0.6931472, %v1987_v47 }
 0xb30   : > { %v636_v53 = vsel %vm635_vm12, %v633_v51, %v630_v49 }
 0xb31   : > { %v637_v54 = vadd.f32 %v636_v53, %v623_v52 }
 0xb33   : > { %v638_v55 = vpack.c.bf16 %v637_v54, %v637_v54 }
 0xb35   : > { %1859 = vmatmul.msk.bf16.vlgmr.msra.gmra.mxu3 %vm104_vm0, %v638_v55 }
 0xb36   : > { %856 = vmatpush.bf16.msra.mxu3 %v2284_v11 }
 0xb3a   : > { %857 = vmatpush.bf16.msra.mxu3 %v2282_v10 }
 0xbb8   : > { %v651_v56 = vpop.f32.mrf.mxu3 }
 0xbb9   : > { %v2471_v57 = vadd.f32 %v2294_v13, %v651_v56 }
 0xbbb   : > { %v655_v58 = vmul.f32 %v2471_v57, %v2345_v48 }
 0xbbd   : > { %v656_v59 = vadd.f32 %v655_v58, %v2446_v3 }
 0xbbf   : > { %v657_v60 = vpack.c.bf16 %v656_v59, %v656_v59 }
 0xbc0   : > { %v653_v61 = vpop.f32.mrf.mxu3 }
 0xbc1   : > { %1860 = vmatmul.msk.bf16.vlgmr.msrb.gmra.mxu0 %vm104_vm0, %v657_v60 }
 0xbc2   : > { %875 = vmatpush.bf16.msrb.mxu0 %v2280_v7 }
 0xbc6   : > { %876 = vmatpush.bf16.msrb.mxu0 %v2278_v4 }
 0xc3e   : > { %v670_v62 = vpop.f32.mrf.mxu0 }
 0xc3f   : > { %v671_v63 = vadd.f32 %v2289_v12, %v670_v62 }
 0xc41   : > { %v675_v0 = vand.u32 2147483647, %v671_v63  ;;  %v674_v17 = vmax.f32 %v671_v63, 0.0 }
 0xc43   : > { %v676_v2 = vsub.f32 0.0, %v675_v0 }
 0xc45   : > { %v677_v5 = vmul.f32 1.442695, %v676_v2 }
 0xc46   : > { %v672_v6 = vpop.f32.mrf.mxu0 }
 0xc47   : > { %1988 = vpow2.f32 %v677_v5 }
 0xc4d   : > { %v1989_v1 = vpop.eup %1988 }
 0xc4e   : > { %v679_v8 = vadd.f32 1.0, %v1989_v1  ;;  %v682_v38 = vmul.f32 -0.5, %v1989_v1  ;;  %v685_v15 = vand.u32 2147483647, %v1989_v1 }
 0xc50   : > { %1990 = vlog2.f32 %v679_v8  ;;  %v683_v9 = vadd.f32 1.0, %v682_v38  ;;  %vm686_vm13 = vcmp.lt.f32.partialorder %v685_v15, 0.0004427343 }
 0xc52   : > { %v684_v20 = vmul.f32 %v1989_v1, %v683_v9 }
 0xc56   : > { %v1991_v18 = vpop.eup %1990 }
 0xc57   : > { %v681_v19 = vmul.f32 0.6931472, %v1991_v18 }
 0xc59   : > { %v687_v21 = vsel %vm686_vm13, %v684_v20, %v681_v19 }
 0xc5a   : > { %v688_v50 = vadd.f32 %v687_v21, %v674_v17 }
 0xc5c   : > { %v689_v22 = vpack.c.bf16 %v688_v50, %v688_v50 }
 0xc5e   : > { %1861 = vmatmul.msk.bf16.vlgmr.msrb.gmra.mxu1 %vm104_vm0, %v689_v22 }
 0xc5f   : > { %907 = vmatpush.bf16.msrb.mxu1 %v2284_v11 }
 0xc63   : > { %908 = vmatpush.bf16.msrb.mxu1 %v2282_v10 }
 0xcdb   : > { %v702_v23 = vpop.f32.mrf.mxu1 }
 0xcdc   : > { %v703_v24 = vadd.f32 %v2294_v13, %v702_v23 }
 0xcde   : > { %v706_v25 = vmul.f32 %v703_v24, %v2375_v42  ;;  %v757_v51 = vadd.f32 %v703_v24, %v2471_v57 }
 0xce0   : > { %v707_v14 = vadd.f32 %v706_v25, %v2446_v3  ;;  %v758_v52 = vmul.f32 2.0, %v757_v51 }
 0xce2   : > { %v708_v26 = vpack.c.bf16 %v707_v14, %v707_v14  ;;  %v759_v55 = vadd.f32 %v758_v52, %v2458_v29 }
 0xce3   : > { %v704_v27 = vpop.f32.mrf.mxu1 }
 0xce4   : > { %1862 = vmatmul.msk.bf16.vlgmr.msrb.gmra.mxu2 %vm104_vm0, %v708_v26 }
 0xce5   : > { %926 = vmatpush.bf16.msrb.mxu2 %v2280_v7 }
 0xce9   : > { %927 = vmatpush.bf16.msrb.mxu2 %v2278_v4 }
 0xd67   : > { %v721_v28 = vpop.f32.mrf.mxu2 }
 0xd68   : > { %v722_v30 = vadd.f32 %v2289_v12, %v721_v28 }
 0xd6a   : > { %v726_v31 = vand.u32 2147483647, %v722_v30  ;;  %v725_v45 = vmax.f32 %v722_v30, 0.0 }
 0xd6c   : > { %v727_v32 = vsub.f32 0.0, %v726_v31 }
 0xd6e   : > { %v728_v33 = vmul.f32 1.442695, %v727_v32 }
 0xd6f   : > { %v723_v34 = vpop.f32.mrf.mxu2 }
 0xd70   : > { %1992 = vpow2.f32 %v728_v33 }
 0xd76   : > { %v1993_v35 = vpop.eup %1992 }
 0xd77   : > { %v730_v36 = vadd.f32 1.0, %v1993_v35  ;;  %v733_v37 = vmul.f32 -0.5, %v1993_v35  ;;  %v736_v40 = vand.u32 2147483647, %v1993_v35 }
 0xd79   : > { %1994 = vlog2.f32 %v730_v36  ;;  %v734_v39 = vadd.f32 1.0, %v733_v37  ;;  %vm737_vm14 = vcmp.lt.f32.partialorder %v736_v40, 0.0004427343 }
 0xd7b   : > { %v735_v44 = vmul.f32 %v1993_v35, %v734_v39 }
 0xd7f   : > { %v1995_v41 = vpop.eup %1994 }
 0xd80   : > { %v732_v43 = vmul.f32 0.6931472, %v1995_v41 }
 0xd82   : > { %v738_v46 = vsel %vm737_vm14, %v735_v44, %v732_v43 }
 0xd83   : > { %v739_v47 = vadd.f32 %v738_v46, %v725_v45 }
 0xd85   : > { %v740_v49 = vpack.c.bf16 %v739_v47, %v739_v47 }
 0xd87   : > { %1863 = vmatmul.msk.bf16.vlgmr.msrb.gmra.mxu3 %vm104_vm0, %v740_v49 }
 0xd88   : > { %958 = vmatpush.bf16.msrb.mxu3 %v2284_v11 }
 0xd8c   : > { %959 = vmatpush.bf16.msrb.mxu3 %v2282_v10 }
 0xe0a   : > { %v753_v53 = vpop.f32.mrf.mxu3 }
 0xe0b   : > { %v754_v54 = vadd.f32 %v2294_v13, %v753_v53 }
 0xe0d   : > { %v760_v56 = vadd.f32 %v759_v55, %v754_v54 }
 0xe0f   : > { %v761_v58 = vmul.f32 %v760_v56, %v2390_v16 }
 0xe11   : > { %v2498_v59 = vadd.f32 %v761_v58, %v2446_v3 }
 0xe12   : > { %v755_v60 = vpop.f32.mrf.mxu3 }
 0xe13   : > { %v763_v61 = vpack.c.bf16 %v2498_v59, %v2498_v59 }
 0xe15   : > { %1864 = vmatmul.msk.bf16.vlgmr.msra.gmra.mxu0 %vm104_vm0, %v763_v61 }
 0xe16   : > { %981 = vmatpush.bf16.msra.mxu0 %v2280_v7 }
 0xe1a   : > { %982 = vmatpush.bf16.msra.mxu0 %v2278_v4 }
 0xe92   : > { %v776_v57 = vpop.f32.mrf.mxu0 }
 0xe93   : > { %v777_v62 = vadd.f32 %v2289_v12, %v776_v57 }
 0xe95   : > { %v781_v29 = vand.u32 2147483647, %v777_v62  ;;  %v780_v18 = vmax.f32 %v777_v62, 0.0 }
 0xe97   : > { %v782_v63 = vsub.f32 0.0, %v781_v29 }
 0xe99   : > { %v783_v0 = vmul.f32 1.442695, %v782_v63 }
 0xe9a   : > { %v778_v2 = vpop.f32.mrf.mxu0 }
 0xe9b   : > { %1996 = vpow2.f32 %v783_v0 }
 0xea1   : > { %v1997_v3 = vpop.eup %1996 }
 0xea2   : > { %v785_v5 = vadd.f32 1.0, %v1997_v3  ;;  %v788_v6 = vmul.f32 -0.5, %v1997_v3  ;;  %v791_v8 = vand.u32 2147483647, %v1997_v3 }
 0xea4   : > { %1998 = vlog2.f32 %v785_v5  ;;  %v789_v1 = vadd.f32 1.0, %v788_v6  ;;  %vm792_vm15 = vcmp.lt.f32.partialorder %v791_v8, 0.0004427343 }
 0xea6   : > { %v790_v15 = vmul.f32 %v1997_v3, %v789_v1 }
 0xeaa   : > { %v1999_v38 = vpop.eup %1998 }
 0xeab   : > { %v787_v9 = vmul.f32 0.6931472, %v1999_v38 }
 0xead   : > { %v793_v19 = vsel %vm792_vm15, %v790_v15, %v787_v9 }
 0xeae   : > { %v794_v20 = vadd.f32 %v793_v19, %v780_v18 }
 0xeb0   : > { %v795_v17 = vpack.c.bf16 %v794_v20, %v794_v20 }
 0xeb2   : > { %1865 = vmatmul.msk.bf16.vlgmr.msra.gmra.mxu1 %vm104_vm0, %v795_v17 }
 0xeb3   : > { %1013 = vmatpush.bf16.msra.mxu1 %v2284_v11 }
 0xeb7   : > { %1014 = vmatpush.bf16.msra.mxu1 %v2282_v10 }
 0xf2f   : > { %v808_v21 = vpop.f32.mrf.mxu1 }
 0xf30   : > { %v2510_v50 = vadd.f32 %v2294_v13, %v808_v21 }
 0xf32   : > { %v812_v22 = vmul.f32 %v2510_v50, %v2345_v48 }
 0xf34   : > { %v813_v23 = vadd.f32 %v812_v22, %v2498_v59 }
 0xf36   : > { %v814_v24 = vpack.c.bf16 %v813_v23, %v813_v23 }
 0xf37   : > { %v810_v25 = vpop.f32.mrf.mxu1 }
 0xf38   : > { %1866 = vmatmul.msk.bf16.vlgmr.msra.gmra.mxu2 %vm104_vm0, %v814_v24 }
 0xf39   : > { %1032 = vmatpush.bf16.msra.mxu2 %v2280_v7 }
 0xf3d   : > { %1033 = vmatpush.bf16.msra.mxu2 %v2278_v4 }
 0xfbb   : > { %v827_v14 = vpop.f32.mrf.mxu2 }
 0xfbc   : > { %v828_v26 = vadd.f32 %v2289_v12, %v827_v14 }
 0xfbe   : > { %v832_v27 = vand.u32 2147483647, %v828_v26  ;;  %v831_v41 = vmax.f32 %v828_v26, 0.0 }
 0xfc0   : > { %v833_v28 = vsub.f32 0.0, %v832_v27 }
 0xfc2   : > { %v834_v30 = vmul.f32 1.442695, %v833_v28 }
 0xfc3   : > { %v829_v31 = vpop.f32.mrf.mxu2 }
 0xfc4   : > { %2000 = vpow2.f32 %v834_v30 }
 0xfca   : > { %v2001_v32 = vpop.eup %2000 }
 0xfcb   : > { %v836_v33 = vadd.f32 1.0, %v2001_v32  ;;  %v839_v34 = vmul.f32 -0.5, %v2001_v32  ;;  %v842_v36 = vand.u32 2147483647, %v2001_v32 }
 0xfcd   : > { %2002 = vlog2.f32 %v836_v33  ;;  %v840_v35 = vadd.f32 1.0, %v839_v34  ;;  %vm843_vm1 = vcmp.lt.f32.partialorder %v842_v36, 0.0004427343 }
 0xfcf   : > { %v841_v40 = vmul.f32 %v2001_v32, %v840_v35 }
 0xfd3   : > { %v2003_v37 = vpop.eup %2002 }
 0xfd4   : > { %v838_v39 = vmul.f32 0.6931472, %v2003_v37 }
 0xfd6   : > { %v844_v43 = vsel %vm843_vm1, %v841_v40, %v838_v39 }
 0xfd7   : > { %v845_v44 = vadd.f32 %v844_v43, %v831_v41 }
 0xfd9   : > { %v846_v45 = vpack.c.bf16 %v845_v44, %v845_v44 }
 0xfdb   : > { %1867 = vmatmul.msk.bf16.vlgmr.msra.gmra.mxu3 %vm104_vm0, %v846_v45 }
 0xfdc   : > { %1064 = vmatpush.bf16.msra.mxu3 %v2284_v11 }
 0xfe0   : > { %1065 = vmatpush.bf16.msra.mxu3 %v2282_v10 }
0x105e   : > { %v859_v46 = vpop.f32.mrf.mxu3 }
0x105f   : > { %v2523_v47 = vadd.f32 %v2294_v13, %v859_v46 }
0x1061   : > { %v863_v49 = vmul.f32 %v2523_v47, %v2345_v48 }
0x1063   : > { %v864_v51 = vadd.f32 %v863_v49, %v2498_v59 }
0x1065   : > { %v865_v52 = vpack.c.bf16 %v864_v51, %v864_v51 }
0x1066   : > { %v861_v53 = vpop.f32.mrf.mxu3 }
0x1067   : > { %1868 = vmatmul.msk.bf16.vlgmr.msrb.gmra.mxu0 %vm104_vm0, %v865_v52 }
0x1068   : > { %1083 = vmatpush.bf16.msrb.mxu0 %v2280_v7 }
0x106c   : > { %1084 = vmatpush.bf16.msrb.mxu0 %v2278_v4 }
0x10e4   : > { %v878_v54 = vpop.f32.mrf.mxu0 }
0x10e5   : > { %v879_v55 = vadd.f32 %v2289_v12, %v878_v54 }
0x10e7   : > { %v883_v56 = vand.u32 2147483647, %v879_v55  ;;  %v882_v6 = vmax.f32 %v879_v55, 0.0 }
0x10e9   : > { %v884_v58 = vsub.f32 0.0, %v883_v56 }
0x10eb   : > { %v885_v60 = vmul.f32 1.442695, %v884_v58 }
0x10ec   : > { %v880_v61 = vpop.f32.mrf.mxu0 }
0x10ed   : > { %2004 = vpow2.f32 %v885_v60 }
0x10f3   : > { %v2005_v57 = vpop.eup %2004 }
0x10f4   : > { %v887_v62 = vadd.f32 1.0, %v2005_v57  ;;  %v890_v29 = vmul.f32 -0.5, %v2005_v57  ;;  %v893_v0 = vand.u32 2147483647, %v2005_v57 }
0x10f6   : > { %2006 = vlog2.f32 %v887_v62  ;;  %v891_v63 = vadd.f32 1.0, %v890_v29  ;;  %vm894_vm2 = vcmp.lt.f32.partialorder %v893_v0, 0.0004427343 }
0x10f8   : > { %v892_v5 = vmul.f32 %v2005_v57, %v891_v63 }
0x10fc   : > { %v2007_v2 = vpop.eup %2006 }
0x10fd   : > { %v889_v3 = vmul.f32 0.6931472, %v2007_v2 }
0x10ff   : > { %v895_v1 = vsel %vm894_vm2, %v892_v5, %v889_v3 }
0x1100   : > { %v896_v8 = vadd.f32 %v895_v1, %v882_v6 }
0x1102   : > { %v897_v38 = vpack.c.bf16 %v896_v8, %v896_v8 }
0x1104   : > { %1869 = vmatmul.msk.bf16.vlgmr.msrb.gmra.mxu1 %vm104_vm0, %v897_v38 }
0x1105   : > { %1115 = vmatpush.bf16.msrb.mxu1 %v2284_v11 }
0x1109   : > { %1116 = vmatpush.bf16.msrb.mxu1 %v2282_v10 }
0x1181   : > { %v910_v9 = vpop.f32.mrf.mxu1 }
0x1182   : > { %v911_v15 = vadd.f32 %v2294_v13, %v910_v9 }
0x1184   : > { %v914_v18 = vmul.f32 %v911_v15, %v2375_v42  ;;  %v965_v40 = vadd.f32 %v911_v15, %v2523_v47 }
0x1186   : > { %v915_v19 = vadd.f32 %v914_v18, %v2498_v59  ;;  %v966_v41 = vmul.f32 2.0, %v965_v40 }
0x1188   : > { %v916_v20 = vpack.c.bf16 %v915_v19, %v915_v19  ;;  %v967_v45 = vadd.f32 %v966_v41, %v2510_v50 }
0x1189   : > { %v912_v17 = vpop.f32.mrf.mxu1 }
0x118a   : > { %1870 = vmatmul.msk.bf16.vlgmr.msrb.gmra.mxu2 %vm104_vm0, %v916_v20 }
0x118b   : > { %1134 = vmatpush.bf16.msrb.mxu2 %v2280_v7 }
0x118f   : > { %1135 = vmatpush.bf16.msrb.mxu2 %v2278_v4 }
0x120d   : > { %v929_v21 = vpop.f32.mrf.mxu2 }
0x120e   : > { %v930_v22 = vadd.f32 %v2289_v12, %v929_v21 }
0x1210   : > { %v934_v23 = vand.u32 2147483647, %v930_v22  ;;  %v933_v35 = vmax.f32 %v930_v22, 0.0 }
0x1212   : > { %v935_v24 = vsub.f32 0.0, %v934_v23 }
0x1214   : > { %v936_v25 = vmul.f32 1.442695, %v935_v24 }
0x1215   : > { %v931_v14 = vpop.f32.mrf.mxu2 }
0x1216   : > { %2008 = vpow2.f32 %v936_v25 }
0x121c   : > { %v2009_v26 = vpop.eup %2008 }
0x121d   : > { %v938_v27 = vadd.f32 1.0, %v2009_v26  ;;  %v941_v28 = vmul.f32 -0.5, %v2009_v26  ;;  %v944_v31 = vand.u32 2147483647, %v2009_v26 }
0x121f   : > { %2010 = vlog2.f32 %v938_v27  ;;  %v942_v30 = vadd.f32 1.0, %v941_v28  ;;  %vm945_vm3 = vcmp.lt.f32.partialorder %v944_v31, 0.0004427343 }
0x1221   : > { %v943_v34 = vmul.f32 %v2009_v26, %v942_v30 }
0x1225   : > { %v2011_v32 = vpop.eup %2010 }
0x1226   : > { %v940_v33 = vmul.f32 0.6931472, %v2011_v32 }
0x1228   : > { %v946_v36 = vsel %vm945_vm3, %v943_v34, %v940_v33 }
0x1229   : > { %v947_v37 = vadd.f32 %v946_v36, %v933_v35 }
0x122b   : > { %v948_v39 = vpack.c.bf16 %v947_v37, %v947_v37 }
0x122d   : > { %1871 = vmatmul.msk.bf16.vlgmr.msrb.gmra.mxu3 %vm104_vm0, %v948_v39 }
0x122e   : > { %1166 = vmatpush.bf16.msrb.mxu3 %v2284_v11 }
0x1232   : > { %1167 = vmatpush.bf16.msrb.mxu3 %v2282_v10 }
0x12b0   : > { %v961_v43 = vpop.f32.mrf.mxu3 }
0x12b1   : > { %v962_v44 = vadd.f32 %v2294_v13, %v961_v43 }
0x12b3   : > { %v968_v46 = vadd.f32 %v967_v45, %v962_v44 }
0x12b5   : > { %v969_v49 = vmul.f32 %v968_v46, %v2390_v16 }
0x12b7   : > { %v2550_v51 = vadd.f32 %v969_v49, %v2498_v59 }
0x12b8   : > { %v963_v52 = vpop.f32.mrf.mxu3 }
0x12b9   : > { %v971_v53 = vpack.c.bf16 %v2550_v51, %v2550_v51 }
0x12bb   : > { %1872 = vmatmul.msk.bf16.vlgmr.msra.gmra.mxu0 %vm104_vm0, %v971_v53 }
0x12bc   : > { %1189 = vmatpush.bf16.msra.mxu0 %v2280_v7 }
0x12c0   : > { %1190 = vmatpush.bf16.msra.mxu0 %v2278_v4 }
0x1338   : > { %v984_v47 = vpop.f32.mrf.mxu0 }
0x1339   : > { %v985_v54 = vadd.f32 %v2289_v12, %v984_v47 }
0x133b   : > { %v989_v50 = vand.u32 2147483647, %v985_v54  ;;  %v988_v2 = vmax.f32 %v985_v54, 0.0 }
0x133d   : > { %v990_v55 = vsub.f32 0.0, %v989_v50 }
0x133f   : > { %v991_v56 = vmul.f32 1.442695, %v990_v55 }
0x1340   : > { %v986_v58 = vpop.f32.mrf.mxu0 }
0x1341   : > { %2012 = vpow2.f32 %v991_v56 }
0x1347   : > { %v2013_v59 = vpop.eup %2012 }
0x1348   : > { %v993_v60 = vadd.f32 1.0, %v2013_v59  ;;  %v996_v61 = vmul.f32 -0.5, %v2013_v59  ;;  %v999_v62 = vand.u32 2147483647, %v2013_v59 }
0x134a   : > { %2014 = vlog2.f32 %v993_v60  ;;  %v997_v57 = vadd.f32 1.0, %v996_v61  ;;  %vm1000_vm4 = vcmp.lt.f32.partialorder %v999_v62, 0.0004427343 }
0x134c   : > { %v998_v0 = vmul.f32 %v2013_v59, %v997_v57 }
0x1350   : > { %v2015_v29 = vpop.eup %2014 }
0x1351   : > { %v995_v63 = vmul.f32 0.6931472, %v2015_v29 }
0x1353   : > { %v1001_v3 = vsel %vm1000_vm4, %v998_v0, %v995_v63 }
0x1354   : > { %v1002_v5 = vadd.f32 %v1001_v3, %v988_v2 }
0x1356   : > { %v1003_v6 = vpack.c.bf16 %v1002_v5, %v1002_v5 }
0x1358   : > { %1873 = vmatmul.msk.bf16.vlgmr.msra.gmra.mxu1 %vm104_vm0, %v1003_v6 }
0x1359   : > { %1221 = vmatpush.bf16.msra.mxu1 %v2284_v11 }
0x135d   : > { %1222 = vmatpush.bf16.msra.mxu1 %v2282_v10 }
0x13d5   : > { %v1016_v1 = vpop.f32.mrf.mxu1 }
0x13d6   : > { %v2562_v8 = vadd.f32 %v2294_v13, %v1016_v1 }
0x13d8   : > { %v1020_v38 = vmul.f32 %v2562_v8, %v2345_v48 }
0x13da   : > { %v1021_v9 = vadd.f32 %v1020_v38, %v2550_v51 }
0x13dc   : > { %v1022_v15 = vpack.c.bf16 %v1021_v9, %v1021_v9 }
0x13dd   : > { %v1018_v18 = vpop.f32.mrf.mxu1 }
0x13de   : > { %1874 = vmatmul.msk.bf16.vlgmr.msra.gmra.mxu2 %vm104_vm0, %v1022_v15 }
0x13df   : > { %1240 = vmatpush.bf16.msra.mxu2 %v2280_v7 }
0x13e3   : > { %1241 = vmatpush.bf16.msra.mxu2 %v2278_v4 }
0x1461   : > { %v1035_v19 = vpop.f32.mrf.mxu2 }
0x1462   : > { %v1036_v20 = vadd.f32 %v2289_v12, %v1035_v19 }
0x1464   : > { %v1040_v17 = vand.u32 2147483647, %v1036_v20  ;;  %v1039_v32 = vmax.f32 %v1036_v20, 0.0 }
0x1466   : > { %v1041_v21 = vsub.f32 0.0, %v1040_v17 }
0x1468   : > { %v1042_v22 = vmul.f32 1.442695, %v1041_v21 }
0x1469   : > { %v1037_v23 = vpop.f32.mrf.mxu2 }
0x146a   : > { %2016 = vpow2.f32 %v1042_v22 }
0x1470   : > { %v2017_v24 = vpop.eup %2016 }
0x1471   : > { %v1044_v25 = vadd.f32 1.0, %v2017_v24  ;;  %v1047_v14 = vmul.f32 -0.5, %v2017_v24  ;;  %v1050_v27 = vand.u32 2147483647, %v2017_v24 }
0x1473   : > { %2018 = vlog2.f32 %v1044_v25  ;;  %v1048_v26 = vadd.f32 1.0, %v1047_v14  ;;  %vm1051_vm5 = vcmp.lt.f32.partialorder %v1050_v27, 0.0004427343 }
0x1475   : > { %v1049_v31 = vmul.f32 %v2017_v24, %v1048_v26 }
0x1479   : > { %v2019_v28 = vpop.eup %2018 }
0x147a   : > { %v1046_v30 = vmul.f32 0.6931472, %v2019_v28 }
0x147c   : > { %v1052_v33 = vsel %vm1051_vm5, %v1049_v31, %v1046_v30 }
0x147d   : > { %v1053_v34 = vadd.f32 %v1052_v33, %v1039_v32 }
0x147f   : > { %v1054_v35 = vpack.c.bf16 %v1053_v34, %v1053_v34 }
0x1481   : > { %1875 = vmatmul.msk.bf16.vlgmr.msra.gmra.mxu3 %vm104_vm0, %v1054_v35 }
0x1482   : > { %1272 = vmatpush.bf16.msra.mxu3 %v2284_v11 }
0x1486   : > { %1273 = vmatpush.bf16.msra.mxu3 %v2282_v10 }
0x1504   : > { %v1067_v36 = vpop.f32.mrf.mxu3 }
0x1505   : > { %v2575_v37 = vadd.f32 %v2294_v13, %v1067_v36 }
0x1507   : > { %v1071_v39 = vmul.f32 %v2575_v37, %v2345_v48 }
0x1509   : > { %v1072_v40 = vadd.f32 %v1071_v39, %v2550_v51 }
0x150b   : > { %v1073_v41 = vpack.c.bf16 %v1072_v40, %v1072_v40 }
0x150c   : > { %v1069_v43 = vpop.f32.mrf.mxu3 }
0x150d   : > { %1876 = vmatmul.msk.bf16.vlgmr.msrb.gmra.mxu0 %vm104_vm0, %v1073_v41 }
0x150e   : > { %1291 = vmatpush.bf16.msrb.mxu0 %v2280_v7 }
0x1512   : > { %1292 = vmatpush.bf16.msrb.mxu0 %v2278_v4 }
0x158a   : > { %v1086_v44 = vpop.f32.mrf.mxu0 }
0x158b   : > { %v1087_v45 = vadd.f32 %v2289_v12, %v1086_v44 }
0x158d   : > { %v1091_v46 = vand.u32 2147483647, %v1087_v45  ;;  %v1090_v61 = vmax.f32 %v1087_v45, 0.0 }
0x158f   : > { %v1092_v49 = vsub.f32 0.0, %v1091_v46 }
0x1591   : > { %v1093_v52 = vmul.f32 1.442695, %v1092_v49 }
0x1592   : > { %v1088_v53 = vpop.f32.mrf.mxu0 }
0x1593   : > { %2020 = vpow2.f32 %v1093_v52 }
0x1599   : > { %v2021_v47 = vpop.eup %2020 }
0x159a   : > { %v1095_v54 = vadd.f32 1.0, %v2021_v47  ;;  %v1098_v50 = vmul.f32 -0.5, %v2021_v47  ;;  %v1101_v56 = vand.u32 2147483647, %v2021_v47 }
0x159c   : > { %2022 = vlog2.f32 %v1095_v54  ;;  %v1099_v55 = vadd.f32 1.0, %v1098_v50  ;;  %vm1102_vm6 = vcmp.lt.f32.partialorder %v1101_v56, 0.0004427343 }
0x159e   : > { %v1100_v60 = vmul.f32 %v2021_v47, %v1099_v55 }
0x15a2   : > { %v2023_v58 = vpop.eup %2022 }
0x15a3   : > { %v1097_v59 = vmul.f32 0.6931472, %v2023_v58 }
0x15a5   : > { %v1103_v57 = vsel %vm1102_vm6, %v1100_v60, %v1097_v59 }
0x15a6   : > { %v1104_v62 = vadd.f32 %v1103_v57, %v1090_v61 }
0x15a8   : > { %v1105_v29 = vpack.c.bf16 %v1104_v62, %v1104_v62 }
0x15aa   : > { %1877 = vmatmul.msk.bf16.vlgmr.msrb.gmra.mxu1 %vm104_vm0, %v1105_v29 }
0x15ab   : > { %1323 = vmatpush.bf16.msrb.mxu1 %v2284_v11 }
0x15af   : > { %1324 = vmatpush.bf16.msrb.mxu1 %v2282_v10 }
0x1627   : > { %v1118_v63 = vpop.f32.mrf.mxu1 }
0x1628   : > { %v1119_v0 = vadd.f32 %v2294_v13, %v1118_v63 }
0x162a   : > { %v1122_v2 = vmul.f32 %v1119_v0, %v2375_v42  ;;  %v1173_v31 = vadd.f32 %v1119_v0, %v2575_v37 }
0x162c   : > { %v1123_v3 = vadd.f32 %v1122_v2, %v2550_v51  ;;  %v1174_v32 = vmul.f32 2.0, %v1173_v31 }
0x162e   : > { %v1124_v5 = vpack.c.bf16 %v1123_v3, %v1123_v3  ;;  %v1175_v35 = vadd.f32 %v1174_v32, %v2562_v8 }
0x162f   : > { %v1120_v6 = vpop.f32.mrf.mxu1 }
0x1630   : > { %1878 = vmatmul.msk.bf16.vlgmr.msrb.gmra.mxu2 %vm104_vm0, %v1124_v5 }
0x1631   : > { %1342 = vmatpush.bf16.msrb.mxu2 %v2280_v7 }
0x1635   : > { %1343 = vmatpush.bf16.msrb.mxu2 %v2278_v4 }
0x16b3   : > { %v1137_v1 = vpop.f32.mrf.mxu2 }
0x16b4   : > { %v1138_v38 = vadd.f32 %v2289_v12, %v1137_v1 }
0x16b6   : > { %v1142_v9 = vand.u32 2147483647, %v1138_v38  ;;  %v1141_v26 = vmax.f32 %v1138_v38, 0.0 }
0x16b8   : > { %v1143_v15 = vsub.f32 0.0, %v1142_v9 }
0x16ba   : > { %v1144_v18 = vmul.f32 1.442695, %v1143_v15 }
0x16bb   : > { %v1139_v19 = vpop.f32.mrf.mxu2 }
0x16bc   : > { %2024 = vpow2.f32 %v1144_v18 }
0x16c2   : > { %v2025_v20 = vpop.eup %2024 }
0x16c3   : > { %v1146_v17 = vadd.f32 1.0, %v2025_v20  ;;  %v1149_v21 = vmul.f32 -0.5, %v2025_v20  ;;  %v1152_v23 = vand.u32 2147483647, %v2025_v20 }
0x16c5   : > { %2026 = vlog2.f32 %v1146_v17  ;;  %v1150_v22 = vadd.f32 1.0, %v1149_v21  ;;  %vm1153_vm7 = vcmp.lt.f32.partialorder %v1152_v23, 0.0004427343 }
0x16c7   : > { %v1151_v14 = vmul.f32 %v2025_v20, %v1150_v22 }
0x16cb   : > { %v2027_v24 = vpop.eup %2026 }
0x16cc   : > { %v1148_v25 = vmul.f32 0.6931472, %v2027_v24 }
0x16ce   : > { %v1154_v27 = vsel %vm1153_vm7, %v1151_v14, %v1148_v25 }
0x16cf   : > { %v1155_v28 = vadd.f32 %v1154_v27, %v1141_v26 }
0x16d1   : > { %v1156_v30 = vpack.c.bf16 %v1155_v28, %v1155_v28 }
0x16d3   : > { %1879 = vmatmul.msk.bf16.vlgmr.msrb.gmra.mxu3 %vm104_vm0, %v1156_v30 }
0x16d4   : > { %1374 = vmatpush.bf16.msrb.mxu3 %v2284_v11 }
0x16d8   : > { %1375 = vmatpush.bf16.msrb.mxu3 %v2282_v10 }
0x1756   : > { %v1169_v33 = vpop.f32.mrf.mxu3 }
0x1757   : > { %v1170_v34 = vadd.f32 %v2294_v13, %v1169_v33 }
0x1759   : > { %v1176_v36 = vadd.f32 %v1175_v35, %v1170_v34 }
0x175b   : > { %v1177_v39 = vmul.f32 %v1176_v36, %v2390_v16 }
0x175d   : > { %v2602_v40 = vadd.f32 %v1177_v39, %v2550_v51 }
0x175e   : > { %v1171_v41 = vpop.f32.mrf.mxu3 }
0x175f   : > { %v1179_v43 = vpack.c.bf16 %v2602_v40, %v2602_v40 }
0x1761   : > { %1880 = vmatmul.msk.bf16.vlgmr.msra.gmra.mxu0 %vm104_vm0, %v1179_v43 }
0x1762   : > { %1397 = vmatpush.bf16.msra.mxu0 %v2280_v7 }
0x1766   : > { %1398 = vmatpush.bf16.msra.mxu0 %v2278_v4 }
0x17de   : > { %v1192_v37 = vpop.f32.mrf.mxu0 }
0x17df   : > { %v1193_v44 = vadd.f32 %v2289_v12, %v1192_v37 }
0x17e1   : > { %v1197_v8 = vand.u32 2147483647, %v1193_v44  ;;  %v1196_v58 = vmax.f32 %v1193_v44, 0.0 }
0x17e3   : > { %v1198_v45 = vsub.f32 0.0, %v1197_v8 }
0x17e5   : > { %v1199_v46 = vmul.f32 1.442695, %v1198_v45 }
0x17e6   : > { %v1194_v49 = vpop.f32.mrf.mxu0 }
0x17e7   : > { %2028 = vpow2.f32 %v1199_v46 }
0x17ed   : > { %v2029_v51 = vpop.eup %2028 }
0x17ee   : > { %v1201_v52 = vadd.f32 1.0, %v2029_v51  ;;  %v1204_v53 = vmul.f32 -0.5, %v2029_v51  ;;  %v1207_v54 = vand.u32 2147483647, %v2029_v51 }
0x17f0   : > { %2030 = vlog2.f32 %v1201_v52  ;;  %v1205_v47 = vadd.f32 1.0, %v1204_v53  ;;  %vm1208_vm8 = vcmp.lt.f32.partialorder %v1207_v54, 0.0004427343 }
0x17f2   : > { %v1206_v56 = vmul.f32 %v2029_v51, %v1205_v47 }
0x17f6   : > { %v2031_v50 = vpop.eup %2030 }
0x17f7   : > { %v1203_v55 = vmul.f32 0.6931472, %v2031_v50 }
0x17f9   : > { %v1209_v59 = vsel %vm1208_vm8, %v1206_v56, %v1203_v55 }
0x17fa   : > { %v1210_v60 = vadd.f32 %v1209_v59, %v1196_v58 }
0x17fc   : > { %v1211_v61 = vpack.c.bf16 %v1210_v60, %v1210_v60 }
0x17fe   : > { %1881 = vmatmul.msk.bf16.vlgmr.msra.gmra.mxu1 %vm104_vm0, %v1211_v61 }
0x17ff   : > { %1429 = vmatpush.bf16.msra.mxu1 %v2284_v11 }
0x1803   : > { %1430 = vmatpush.bf16.msra.mxu1 %v2282_v10 }
0x187b   : > { %v1224_v57 = vpop.f32.mrf.mxu1 }
0x187c   : > { %v2614_v62 = vadd.f32 %v2294_v13, %v1224_v57 }
0x187e   : > { %v1228_v29 = vmul.f32 %v2614_v62, %v2345_v48 }
0x1880   : > { %v1229_v63 = vadd.f32 %v1228_v29, %v2602_v40 }
0x1882   : > { %v1230_v0 = vpack.c.bf16 %v1229_v63, %v1229_v63 }
0x1883   : > { %v1226_v2 = vpop.f32.mrf.mxu1 }
0x1884   : > { %1882 = vmatmul.msk.bf16.vlgmr.msra.gmra.mxu2 %vm104_vm0, %v1230_v0 }
0x1885   : > { %1448 = vmatpush.bf16.msra.mxu2 %v2280_v7 }
0x1889   : > { %1449 = vmatpush.bf16.msra.mxu2 %v2278_v4 }
0x1907   : > { %v1243_v3 = vpop.f32.mrf.mxu2 }
0x1908   : > { %v1244_v5 = vadd.f32 %v2289_v12, %v1243_v3 }
0x190a   : > { %v1248_v6 = vand.u32 2147483647, %v1244_v5  ;;  %v1247_v24 = vmax.f32 %v1244_v5, 0.0 }
0x190c   : > { %v1249_v1 = vsub.f32 0.0, %v1248_v6 }
0x190e   : > { %v1250_v38 = vmul.f32 1.442695, %v1249_v1 }
0x190f   : > { %v1245_v9 = vpop.f32.mrf.mxu2 }
0x1910   : > { %2032 = vpow2.f32 %v1250_v38 }
0x1916   : > { %v2033_v15 = vpop.eup %2032 }
0x1917   : > { %v1252_v18 = vadd.f32 1.0, %v2033_v15  ;;  %v1255_v19 = vmul.f32 -0.5, %v2033_v15  ;;  %v1258_v17 = vand.u32 2147483647, %v2033_v15 }
0x1919   : > { %2034 = vlog2.f32 %v1252_v18  ;;  %v1256_v20 = vadd.f32 1.0, %v1255_v19  ;;  %vm1259_vm9 = vcmp.lt.f32.partialorder %v1258_v17, 0.0004427343 }
0x191b   : > { %v1257_v23 = vmul.f32 %v2033_v15, %v1256_v20 }
0x191f   : > { %v2035_v21 = vpop.eup %2034 }
0x1920   : > { %v1254_v22 = vmul.f32 0.6931472, %v2035_v21 }
0x1922   : > { %v1260_v25 = vsel %vm1259_vm9, %v1257_v23, %v1254_v22 }
0x1923   : > { %v1261_v14 = vadd.f32 %v1260_v25, %v1247_v24 }
0x1925   : > { %v1262_v26 = vpack.c.bf16 %v1261_v14, %v1261_v14 }
0x1927   : > { %1883 = vmatmul.msk.bf16.vlgmr.msra.gmra.mxu3 %vm104_vm0, %v1262_v26 }
0x1928   : > { %1480 = vmatpush.bf16.msra.mxu3 %v2284_v11 }
0x192c   : > { %1481 = vmatpush.bf16.msra.mxu3 %v2282_v10 }
0x19aa   : > { %v1275_v27 = vpop.f32.mrf.mxu3 }
0x19ab   : > { %v2627_v28 = vadd.f32 %v2294_v13, %v1275_v27 }
0x19ad   : > { %v1279_v30 = vmul.f32 %v2627_v28, %v2345_v48 }
0x19af   : > { %v1280_v31 = vadd.f32 %v1279_v30, %v2602_v40 }
0x19b1   : > { %v1281_v32 = vpack.c.bf16 %v1280_v31, %v1280_v31 }
0x19b2   : > { %v1277_v33 = vpop.f32.mrf.mxu3 }
0x19b3   : > { %1884 = vmatmul.msk.bf16.vlgmr.msrb.gmra.mxu0 %vm104_vm0, %v1281_v32 }
0x19b4   : > { %1499 = vmatpush.bf16.msrb.mxu0 %v2280_v7 }
0x19b8   : > { %1500 = vmatpush.bf16.msrb.mxu0 %v2278_v4 }
0x1a30   : > { %v1294_v34 = vpop.f32.mrf.mxu0 }
0x1a31   : > { %v1295_v35 = vadd.f32 %v2289_v12, %v1294_v34 }
0x1a33   : > { %v1299_v36 = vand.u32 2147483647, %v1295_v35  ;;  %v1298_v53 = vmax.f32 %v1295_v35, 0.0 }
0x1a35   : > { %v1300_v39 = vsub.f32 0.0, %v1299_v36 }
0x1a37   : > { %v1301_v41 = vmul.f32 1.442695, %v1300_v39 }
0x1a38   : > { %v1296_v43 = vpop.f32.mrf.mxu0 }
0x1a39   : > { %2036 = vpow2.f32 %v1301_v41 }
0x1a3f   : > { %v2037_v37 = vpop.eup %2036 }
0x1a40   : > { %v1303_v44 = vadd.f32 1.0, %v2037_v37  ;;  %v1306_v8 = vmul.f32 -0.5, %v2037_v37  ;;  %v1309_v46 = vand.u32 2147483647, %v2037_v37 }
0x1a42   : > { %2038 = vlog2.f32 %v1303_v44  ;;  %v1307_v45 = vadd.f32 1.0, %v1306_v8  ;;  %vm1310_vm10 = vcmp.lt.f32.partialorder %v1309_v46, 0.0004427343 }
0x1a44   : > { %v1308_v52 = vmul.f32 %v2037_v37, %v1307_v45 }
0x1a48   : > { %v2039_v49 = vpop.eup %2038 }
0x1a49   : > { %v1305_v51 = vmul.f32 0.6931472, %v2039_v49 }
0x1a4b   : > { %v1311_v47 = vsel %vm1310_vm10, %v1308_v52, %v1305_v51 }
0x1a4c   : > { %v1312_v54 = vadd.f32 %v1311_v47, %v1298_v53 }
0x1a4e   : > { %v1313_v50 = vpack.c.bf16 %v1312_v54, %v1312_v54 }
0x1a50   : > { %1885 = vmatmul.msk.bf16.vlgmr.msrb.gmra.mxu1 %vm104_vm0, %v1313_v50 }
0x1a51   : > { %1531 = vmatpush.bf16.msrb.mxu1 %v2284_v11 }
0x1a55   : > { %1532 = vmatpush.bf16.msrb.mxu1 %v2282_v10 }
0x1acd   : > { %v1326_v55 = vpop.f32.mrf.mxu1 }
0x1ace   : > { %v1327_v56 = vadd.f32 %v2294_v13, %v1326_v55 }
0x1ad0   : > { %v1330_v58 = vmul.f32 %v1327_v56, %v2375_v42  ;;  %v1381_v23 = vadd.f32 %v1327_v56, %v2627_v28 }
0x1ad2   : > { %v1331_v59 = vadd.f32 %v1330_v58, %v2602_v40  ;;  %v1382_v24 = vmul.f32 2.0, %v1381_v23 }
0x1ad4   : > { %v1332_v60 = vpack.c.bf16 %v1331_v59, %v1331_v59  ;;  %v1383_v26 = vadd.f32 %v1382_v24, %v2614_v62 }
0x1ad5   : > { %v1328_v61 = vpop.f32.mrf.mxu1 }
0x1ad6   : > { %1886 = vmatmul.msk.bf16.vlgmr.msrb.gmra.mxu2 %vm104_vm0, %v1332_v60 }
0x1ad7   : > { %1550 = vmatpush.bf16.msrb.mxu2 %v2280_v7 }
0x1adb   : > { %1551 = vmatpush.bf16.msrb.mxu2 %v2278_v4 }
0x1b59   : > { %v1345_v57 = vpop.f32.mrf.mxu2 }
0x1b5a   : > { %v1346_v29 = vadd.f32 %v2289_v12, %v1345_v57 }
0x1b5c   : > { %v1350_v63 = vand.u32 2147483647, %v1346_v29  ;;  %v1349_v20 = vmax.f32 %v1346_v29, 0.0 }
0x1b5e   : > { %v1351_v0 = vsub.f32 0.0, %v1350_v63 }
0x1b60   : > { %v1352_v2 = vmul.f32 1.442695, %v1351_v0 }
0x1b61   : > { %v1347_v3 = vpop.f32.mrf.mxu2 }
0x1b62   : > { %2040 = vpow2.f32 %v1352_v2 }
0x1b68   : > { %v2041_v5 = vpop.eup %2040 }
0x1b69   : > { %v1354_v6 = vadd.f32 1.0, %v2041_v5  ;;  %v1357_v1 = vmul.f32 -0.5, %v2041_v5  ;;  %v1360_v9 = vand.u32 2147483647, %v2041_v5 }
0x1b6b   : > { %2042 = vlog2.f32 %v1354_v6  ;;  %v1358_v38 = vadd.f32 1.0, %v1357_v1  ;;  %vm1361_vm11 = vcmp.lt.f32.partialorder %v1360_v9, 0.0004427343 }
0x1b6d   : > { %v1359_v19 = vmul.f32 %v2041_v5, %v1358_v38 }
0x1b71   : > { %v2043_v15 = vpop.eup %2042 }
0x1b72   : > { %v1356_v18 = vmul.f32 0.6931472, %v2043_v15 }
0x1b74   : > { %v1362_v17 = vsel %vm1361_vm11, %v1359_v19, %v1356_v18 }
0x1b75   : > { %v1363_v21 = vadd.f32 %v1362_v17, %v1349_v20 }
0x1b77   : > { %v1364_v22 = vpack.c.bf16 %v1363_v21, %v1363_v21 }
0x1b79   : > { %1887 = vmatmul.msk.bf16.vlgmr.msrb.gmra.mxu3 %vm104_vm0, %v1364_v22 }
0x1b7a   : > { %1582 = vmatpush.bf16.msrb.mxu3 %v2284_v11 }
0x1b7e   : > { %1583 = vmatpush.bf16.msrb.mxu3 %v2282_v10 }
0x1bfc   : > { %v1377_v25 = vpop.f32.mrf.mxu3 }
0x1bfd   : > { %v1378_v14 = vadd.f32 %v2294_v13, %v1377_v25 }
0x1bff   : > { %v1384_v27 = vadd.f32 %v1383_v26, %v1378_v14 }
0x1c01   : > { %v1385_v30 = vmul.f32 %v1384_v27, %v2390_v16 }
0x1c03   : > { %v2654_v31 = vadd.f32 %v1385_v30, %v2602_v40 }
0x1c04   : > { %v1379_v32 = vpop.f32.mrf.mxu3 }
0x1c05   : > { %v1387_v33 = vpack.c.bf16 %v2654_v31, %v2654_v31 }
0x1c07   : > { %1888 = vmatmul.msk.bf16.vlgmr.msra.gmra.mxu0 %vm104_vm0, %v1387_v33 }
0x1c08   : > { %1605 = vmatpush.bf16.msra.mxu0 %v2280_v7 }
0x1c0c   : > { %1606 = vmatpush.bf16.msra.mxu0 %v2278_v4 }
0x1c84   : > { %v1400_v28 = vpop.f32.mrf.mxu0 }
0x1c85   : > { %v1401_v34 = vadd.f32 %v2289_v12, %v1400_v28 }
0x1c87   : > { %v1405_v62 = vand.u32 2147483647, %v1401_v34  ;;  %v1404_v49 = vmax.f32 %v1401_v34, 0.0 }
0x1c89   : > { %v1406_v35 = vsub.f32 0.0, %v1405_v62 }
0x1c8b   : > { %v1407_v36 = vmul.f32 1.442695, %v1406_v35 }
0x1c8c   : > { %v1402_v39 = vpop.f32.mrf.mxu0 }
0x1c8d   : > { %2044 = vpow2.f32 %v1407_v36 }
0x1c93   : > { %v2045_v40 = vpop.eup %2044 }
0x1c94   : > { %v1409_v41 = vadd.f32 1.0, %v2045_v40  ;;  %v1412_v43 = vmul.f32 -0.5, %v2045_v40  ;;  %v1415_v44 = vand.u32 2147483647, %v2045_v40 }
0x1c96   : > { %2046 = vlog2.f32 %v1409_v41  ;;  %v1413_v37 = vadd.f32 1.0, %v1412_v43  ;;  %vm1416_vm12 = vcmp.lt.f32.partialorder %v1415_v44, 0.0004427343 }
0x1c98   : > { %v1414_v46 = vmul.f32 %v2045_v40, %v1413_v37 }
0x1c9c   : > { %v2047_v8 = vpop.eup %2046 }
0x1c9d   : > { %v1411_v45 = vmul.f32 0.6931472, %v2047_v8 }
0x1c9f   : > { %v1417_v51 = vsel %vm1416_vm12, %v1414_v46, %v1411_v45 }
0x1ca0   : > { %v1418_v52 = vadd.f32 %v1417_v51, %v1404_v49 }
0x1ca2   : > { %v1419_v53 = vpack.c.bf16 %v1418_v52, %v1418_v52 }
0x1ca4   : > { %1889 = vmatmul.msk.bf16.vlgmr.msra.gmra.mxu1 %vm104_vm0, %v1419_v53 }
0x1ca5   : > { %1637 = vmatpush.bf16.msra.mxu1 %v2284_v11 }
0x1ca9   : > { %1638 = vmatpush.bf16.msra.mxu1 %v2282_v10 }
0x1d21   : > { %v1432_v47 = vpop.f32.mrf.mxu1 }
0x1d22   : > { %v2666_v54 = vadd.f32 %v2294_v13, %v1432_v47 }
0x1d24   : > { %v1436_v50 = vmul.f32 %v2666_v54, %v2345_v48 }
0x1d26   : > { %v1437_v55 = vadd.f32 %v1436_v50, %v2654_v31 }
0x1d28   : > { %v1438_v56 = vpack.c.bf16 %v1437_v55, %v1437_v55 }
0x1d29   : > { %v1434_v58 = vpop.f32.mrf.mxu1 }
0x1d2a   : > { %1890 = vmatmul.msk.bf16.vlgmr.msra.gmra.mxu2 %vm104_vm0, %v1438_v56 }
0x1d2b   : > { %1656 = vmatpush.bf16.msra.mxu2 %v2280_v7 }
0x1d2f   : > { %1657 = vmatpush.bf16.msra.mxu2 %v2278_v4 }
0x1dad   : > { %v1451_v59 = vpop.f32.mrf.mxu2 }
0x1dae   : > { %v1452_v60 = vadd.f32 %v2289_v12, %v1451_v59 }
0x1db0   : > { %v1456_v61 = vand.u32 2147483647, %v1452_v60  ;;  %v1455_v15 = vmax.f32 %v1452_v60, 0.0 }
0x1db2   : > { %v1457_v57 = vsub.f32 0.0, %v1456_v61 }
0x1db4   : > { %v1458_v29 = vmul.f32 1.442695, %v1457_v57 }
0x1db5   : > { %v1453_v63 = vpop.f32.mrf.mxu2 }
0x1db6   : > { %2048 = vpow2.f32 %v1458_v29 }
0x1dbc   : > { %v2049_v0 = vpop.eup %2048 }
0x1dbd   : > { %v1460_v2 = vadd.f32 1.0, %v2049_v0  ;;  %v1463_v3 = vmul.f32 -0.5, %v2049_v0  ;;  %v1466_v6 = vand.u32 2147483647, %v2049_v0 }
0x1dbf   : > { %2050 = vlog2.f32 %v1460_v2  ;;  %v1464_v5 = vadd.f32 1.0, %v1463_v3  ;;  %vm1467_vm13 = vcmp.lt.f32.partialorder %v1466_v6, 0.0004427343 }
0x1dc1   : > { %v1465_v9 = vmul.f32 %v2049_v0, %v1464_v5 }
0x1dc5   : > { %v2051_v1 = vpop.eup %2050 }
0x1dc6   : > { %v1462_v38 = vmul.f32 0.6931472, %v2051_v1 }
0x1dc8   : > { %v1468_v18 = vsel %vm1467_vm13, %v1465_v9, %v1462_v38 }
0x1dc9   : > { %v1469_v19 = vadd.f32 %v1468_v18, %v1455_v15 }
0x1dcb   : > { %v1470_v20 = vpack.c.bf16 %v1469_v19, %v1469_v19 }
0x1dcd   : > { %1891 = vmatmul.msk.bf16.vlgmr.msra.gmra.mxu3 %vm104_vm0, %v1470_v20 }
0x1dce   : > { %1688 = vmatpush.bf16.msra.mxu3 %v2284_v11 }
0x1dd2   : > { %1689 = vmatpush.bf16.msra.mxu3 %v2282_v10 }
0x1e50   : > { %v1483_v17 = vpop.f32.mrf.mxu3 }
0x1e51   : > { %v2679_v21 = vadd.f32 %v2294_v13, %v1483_v17 }
0x1e53   : > { %v1487_v22 = vmul.f32 %v2679_v21, %v2345_v48 }
0x1e55   : > { %v1488_v23 = vadd.f32 %v1487_v22, %v2654_v31 }
0x1e57   : > { %v1489_v24 = vpack.c.bf16 %v1488_v23, %v1488_v23 }
0x1e58   : > { %v1485_v25 = vpop.f32.mrf.mxu3 }
0x1e59   : > { %1892 = vmatmul.msk.bf16.vlgmr.msrb.gmra.mxu0 %vm104_vm0, %v1489_v24 }
0x1e5a   : > { %1707 = vmatpush.bf16.msrb.mxu0 %v2280_v7 }
0x1e5e   : > { %1708 = vmatpush.bf16.msrb.mxu0 %v2278_v4 }
0x1ed6   : > { %v1502_v14 = vpop.f32.mrf.mxu0 }
0x1ed7   : > { %v1503_v26 = vadd.f32 %v2289_v12, %v1502_v14 }
0x1ed9   : > { %v1507_v27 = vand.u32 2147483647, %v1503_v26  ;;  %v1506_v43 = vmax.f32 %v1503_v26, 0.0 }
0x1edb   : > { %v1508_v30 = vsub.f32 0.0, %v1507_v27 }
0x1edd   : > { %v1509_v32 = vmul.f32 1.442695, %v1508_v30 }
0x1ede   : > { %v1504_v33 = vpop.f32.mrf.mxu0 }
0x1edf   : > { %2052 = vpow2.f32 %v1509_v32 }
0x1ee5   : > { %v2053_v28 = vpop.eup %2052 }
0x1ee6   : > { %v1511_v34 = vadd.f32 1.0, %v2053_v28  ;;  %v1514_v62 = vmul.f32 -0.5, %v2053_v28  ;;  %v1517_v36 = vand.u32 2147483647, %v2053_v28 }
0x1ee8   : > { %2054 = vlog2.f32 %v1511_v34  ;;  %v1515_v35 = vadd.f32 1.0, %v1514_v62  ;;  %vm1518_vm14 = vcmp.lt.f32.partialorder %v1517_v36, 0.0004427343 }
0x1eea   : > { %v1516_v41 = vmul.f32 %v2053_v28, %v1515_v35 }
0x1eee   : > { %v2055_v39 = vpop.eup %2054 }
0x1eef   : > { %v1513_v40 = vmul.f32 0.6931472, %v2055_v39 }
0x1ef1   : > { %v1519_v37 = vsel %vm1518_vm14, %v1516_v41, %v1513_v40 }
0x1ef2   : > { %v1520_v44 = vadd.f32 %v1519_v37, %v1506_v43 }
0x1ef4   : > { %v1521_v8 = vpack.c.bf16 %v1520_v44, %v1520_v44 }
0x1ef6   : > { %1893 = vmatmul.msk.bf16.vlgmr.msrb.gmra.mxu1 %vm104_vm0, %v1521_v8 }
0x1ef7   : > { %1739 = vmatpush.bf16.msrb.mxu1 %v2284_v11 }
0x1efb   : > { %1740 = vmatpush.bf16.msrb.mxu1 %v2282_v10 }
0x1f73   : > { %v1534_v45 = vpop.f32.mrf.mxu1 }
0x1f74   : > { %v1535_v46 = vadd.f32 %v2294_v13, %v1534_v45 }
0x1f76   : > { %v1538_v49 = vmul.f32 %v1535_v46, %v2375_v42  ;;  %v1589_v9 = vadd.f32 %v1535_v46, %v2679_v21 }
0x1f78   : > { %v1539_v51 = vadd.f32 %v1538_v49, %v2654_v31  ;;  %v1590_v15 = vmul.f32 2.0, %v1589_v9 }
0x1f7a   : > { %v1540_v52 = vpack.c.bf16 %v1539_v51, %v1539_v51  ;;  %v1591_v20 = vadd.f32 %v1590_v15, %v2666_v54 }
0x1f7b   : > { %v1536_v53 = vpop.f32.mrf.mxu1 }
0x1f7c   : > { %1894 = vmatmul.msk.bf16.vlgmr.msrb.gmra.mxu2 %vm104_vm0, %v1540_v52 }
0x1f7d   : > { %1758 = vmatpush.bf16.msrb.mxu2 %v2280_v7 }
0x1f81   : > { %1759 = vmatpush.bf16.msrb.mxu2 %v2278_v4 }
0x1fff   : > { %v1553_v47 = vpop.f32.mrf.mxu2 }
0x2000   : > { %v1554_v50 = vadd.f32 %v2289_v12, %v1553_v47 }
0x2002   : > { %v1558_v55 = vand.u32 2147483647, %v1554_v50  ;;  %v1557_v5 = vmax.f32 %v1554_v50, 0.0 }
0x2004   : > { %v1559_v56 = vsub.f32 0.0, %v1558_v55 }
0x2006   : > { %v1560_v58 = vmul.f32 1.442695, %v1559_v56 }
0x2007   : > { %v1555_v59 = vpop.f32.mrf.mxu2 }
0x2008   : > { %2056 = vpow2.f32 %v1560_v58 }
0x200e   : > { %v2057_v60 = vpop.eup %2056 }
0x200f   : > { %v1562_v61 = vadd.f32 1.0, %v2057_v60  ;;  %v1565_v57 = vmul.f32 -0.5, %v2057_v60  ;;  %v1568_v63 = vand.u32 2147483647, %v2057_v60 }
0x2011   : > { %2058 = vlog2.f32 %v1562_v61  ;;  %v1566_v29 = vadd.f32 1.0, %v1565_v57  ;;  %vm1569_vm15 = vcmp.lt.f32.partialorder %v1568_v63, 0.0004427343 }
0x2013   : > { %v1567_v3 = vmul.f32 %v2057_v60, %v1566_v29 }
0x2017   : > { %v2059_v0 = vpop.eup %2058 }
0x2018   : > { %v1564_v2 = vmul.f32 0.6931472, %v2059_v0 }
0x201a   : > { %v1570_v6 = vsel %vm1569_vm15, %v1567_v3, %v1564_v2 }
0x201b   : > { %v1571_v1 = vadd.f32 %v1570_v6, %v1557_v5 }
0x201d   : > { %v1572_v38 = vpack.c.bf16 %v1571_v1, %v1571_v1 }
0x201f   : > { %1895 = vmatmul.msk.bf16.vlgmr.msrb.gmra.mxu3 %vm104_vm0, %v1572_v38 }
0x2020   : > { %1790 = vmatpush.bf16.msrb.mxu3 %v2284_v11 }
0x2024   : > { %1791 = vmatpush.bf16.msrb.mxu3 %v2282_v10 }
0x20a2   : > { %v1585_v18 = vpop.f32.mrf.mxu3 }
0x20a3   : > { %v1586_v19 = vadd.f32 %v2294_v13, %v1585_v18 }
0x20a5   : > { %v1592_v17 = vadd.f32 %v1591_v20, %v1586_v19 }
0x20a7   : > { %v1593_v22 = vmul.f32 %v1592_v17, %v2390_v16 }
0x20a9   : > { %v2706_v23 = vadd.f32 %v1593_v22, %v2654_v31 }
0x20aa   : > { %v1587_v24 = vpop.f32.mrf.mxu3 }
0x20ab   : > { %v1595_v25 = vpack.c.bf16 %v2706_v23, %v2706_v23 }
0x20ad   : > { %1896 = vmatmul.msk.bf16.vlgmr.msra.gmra.mxu0 %vm104_vm0, %v1595_v25 }
0x212a   : > { %v1608_v14 = vpop.f32.mrf.mxu0 }
0x212b   : > { %v1609_v21 = vadd.f32 %v2289_v12, %v1608_v14 }
0x212d   : > { %v1613_v26 = vand.u32 2147483647, %v1609_v21  ;;  %v1612_v39 = vmax.f32 %v1609_v21, 0.0 }
0x212f   : > { %v1614_v27 = vsub.f32 0.0, %v1613_v26 }
0x2131   : > { %v1615_v30 = vmul.f32 1.442695, %v1614_v27 }
0x2132   : > { %v1610_v32 = vpop.f32.mrf.mxu0 }
0x2133   : > { %2060 = vpow2.f32 %v1615_v30 }
0x2139   : > { %v2061_v54 = vpop.eup %2060 }
0x213a   : > { %v1617_v33 = vadd.f32 1.0, %v2061_v54  ;;  %v1620_v28 = vmul.f32 -0.5, %v2061_v54  ;;  %v1623_v34 = vand.u32 2147483647, %v2061_v54 }
0x213c   : > { %2062 = vlog2.f32 %v1617_v33  ;;  %v1621_v31 = vadd.f32 1.0, %v1620_v28  ;;  %vm1624_vm1 = vcmp.lt.f32.partialorder %v1623_v34, 0.0004427343 }
0x213e   : > { %v1622_v36 = vmul.f32 %v2061_v54, %v1621_v31 }
0x2142   : > { %v2063_v62 = vpop.eup %2062 }
0x2143   : > { %v1619_v35 = vmul.f32 0.6931472, %v2063_v62 }
0x2145   : > { %v1625_v40 = vsel %vm1624_vm1, %v1622_v36, %v1619_v35 }
0x2146   : > { %v1626_v41 = vadd.f32 %v1625_v40, %v1612_v39 }
0x2148   : > { %v1627_v43 = vpack.c.bf16 %v1626_v41, %v1626_v41 }
0x214a   : > { %1897 = vmatmul.msk.bf16.vlgmr.msra.gmra.mxu1 %vm104_vm0, %v1627_v43 }
0x21c7   : > { %v1640_v37 = vpop.f32.mrf.mxu1 }
0x21c8   : > { %v2714_v44 = vadd.f32 %v2294_v13, %v1640_v37 }
0x21ca   : > { %v1644_v8 = vmul.f32 %v2714_v44, %v2345_v48 }
0x21cc   : > { %v1645_v45 = vadd.f32 %v1644_v8, %v2706_v23 }
0x21ce   : > { %v1646_v46 = vpack.c.bf16 %v1645_v45, %v1645_v45 }
0x21cf   : > { %v1642_v49 = vpop.f32.mrf.mxu1 }
0x21d0   : > { %1898 = vmatmul.msk.bf16.vlgmr.msra.gmra.mxu2 %vm104_vm0, %v1646_v46 }
0x2253   : > { %v1659_v51 = vpop.f32.mrf.mxu2 }
0x2254   : > { %v1660_v52 = vadd.f32 %v2289_v12, %v1659_v51 }
0x2256   : > { %v1664_v53 = vand.u32 2147483647, %v1660_v52  ;;  %v1663_v0 = vmax.f32 %v1660_v52, 0.0 }
0x2258   : > { %v1665_v47 = vsub.f32 0.0, %v1664_v53 }
0x225a   : > { %v1666_v50 = vmul.f32 1.442695, %v1665_v47 }
0x225b   : > { %v1661_v55 = vpop.f32.mrf.mxu2 }
0x225c   : > { %2064 = vpow2.f32 %v1666_v50 }
0x2262   : > { %v2065_v56 = vpop.eup %2064 }
0x2263   : > { %v1668_v58 = vadd.f32 1.0, %v2065_v56  ;;  %v1671_v59 = vmul.f32 -0.5, %v2065_v56  ;;  %v1674_v61 = vand.u32 2147483647, %v2065_v56 }
0x2265   : > { %2066 = vlog2.f32 %v1668_v58  ;;  %v1672_v60 = vadd.f32 1.0, %v1671_v59  ;;  %vm1675_vm2 = vcmp.lt.f32.partialorder %v1674_v61, 0.0004427343 }
0x2267   : > { %v1673_v63 = vmul.f32 %v2065_v56, %v1672_v60 }
0x226b   : > { %v2067_v57 = vpop.eup %2066 }
0x226c   : > { %v1670_v29 = vmul.f32 0.6931472, %v2067_v57 }
0x226e   : > { %v1676_v2 = vsel %vm1675_vm2, %v1673_v63, %v1670_v29 }
0x226f   : > { %v1677_v3 = vadd.f32 %v1676_v2, %v1663_v0 }
0x2271   : > { %v1678_v5 = vpack.c.bf16 %v1677_v3, %v1677_v3 }
0x2273   : > { %1899 = vmatmul.msk.bf16.vlgmr.msra.gmra.mxu3 %vm104_vm0, %v1678_v5 }
0x22f6   : > { %v1691_v6 = vpop.f32.mrf.mxu3 }
0x22f7   : > { %v1692_v1 = vadd.f32 %v2294_v13, %v1691_v6 }
0x22f9   : > { %v1695_v38 = vmul.f32 %v1692_v1, %v2345_v48 }
0x22fb   : > { %v1696_v9 = vadd.f32 %v1695_v38, %v2706_v23 }
0x22fd   : > { %v1697_v15 = vpack.c.bf16 %v1696_v9, %v1696_v9 }
0x22fe   : > { %v1693_v18 = vpop.f32.mrf.mxu3 }
0x22ff   : > { %1900 = vmatmul.msk.bf16.vlgmr.msrb.gmra.mxu0 %vm104_vm0, %v1697_v15 }
0x237c   : > { %v1710_v19 = vpop.f32.mrf.mxu0 }
0x237d   : > { %v1711_v20 = vadd.f32 %v2289_v12, %v1710_v19 }
0x237f   : > { %v1715_v17 = vand.u32 2147483647, %v1711_v20  ;;  %v1714_v33 = vmax.f32 %v1711_v20, 0.0 }
0x2381   : > { %v1716_v22 = vsub.f32 0.0, %v1715_v17 }
0x2383   : > { %v1717_v24 = vmul.f32 1.442695, %v1716_v22 }
0x2384   : > { %v1712_v25 = vpop.f32.mrf.mxu0 }
0x2385   : > { %2068 = vpow2.f32 %v1717_v24 }
0x238b   : > { %v2069_v14 = vpop.eup %2068 }
0x238c   : > { %v1719_v21 = vadd.f32 1.0, %v2069_v14  ;;  %v1722_v26 = vmul.f32 -0.5, %v2069_v14  ;;  %v1725_v48 = vand.u32 2147483647, %v2069_v14 }
0x238e   : > { %2070 = vlog2.f32 %v1719_v21  ;;  %v1723_v27 = vadd.f32 1.0, %v1722_v26  ;;  %vm1726_vm3 = vcmp.lt.f32.partialorder %v1725_v48, 0.0004427343 }
0x2390   : > { %v1724_v54 = vmul.f32 %v2069_v14, %v1723_v27 }
0x2394   : > { %v2071_v30 = vpop.eup %2070 }
0x2395   : > { %v1721_v32 = vmul.f32 0.6931472, %v2071_v30 }
0x2397   : > { %v1727_v28 = vsel %vm1726_vm3, %v1724_v54, %v1721_v32 }
0x2398   : > { %v1728_v31 = vadd.f32 %v1727_v28, %v1714_v33 }
0x239a   : > { %v1729_v34 = vpack.c.bf16 %v1728_v31, %v1728_v31 }
0x239c   : > { %1901 = vmatmul.msk.bf16.vlgmr.msrb.gmra.mxu1 %vm104_vm0, %v1729_v34 }
0x2419   : > { %v1742_v62 = vpop.f32.mrf.mxu1 }
0x241a   : > { %v1743_v35 = vadd.f32 %v2294_v13, %v1742_v62 }
0x241c   : > { %v1746_v36 = vmul.f32 %v1743_v35, %v2375_v42  ;;  %v1797_v57 = vadd.f32 %v1743_v35, %v1692_v1 }
0x241e   : > { %v1747_v39 = vadd.f32 %v1746_v36, %v2706_v23  ;;  %v1798_v29 = vmul.f32 2.0, %v1797_v57 }
0x2420   : > { %v1748_v40 = vpack.c.bf16 %v1747_v39, %v1747_v39  ;;  %v1799_v2 = vadd.f32 %v1798_v29, %v2714_v44 }
0x2421   : > { %v1744_v41 = vpop.f32.mrf.mxu1 }
0x2422   : > { %1902 = vmatmul.msk.bf16.vlgmr.msrb.gmra.mxu2 %vm104_vm0, %v1748_v40 }
0x24a5   : > { %v1761_v43 = vpop.f32.mrf.mxu2 }
0x24a6   : > { %v1762_v37 = vadd.f32 %v2289_v12, %v1761_v43 }
0x24a8   : > { %v1766_v8 = vand.u32 2147483647, %v1762_v37  ;;  %v1765_v58 = vmax.f32 %v1762_v37, 0.0 }
0x24aa   : > { %v1767_v45 = vsub.f32 0.0, %v1766_v8 }
0x24ac   : > { %v1768_v46 = vmul.f32 1.442695, %v1767_v45 }
0x24ad   : > { %v1763_v49 = vpop.f32.mrf.mxu2 }
0x24ae   : > { %2072 = vpow2.f32 %v1768_v46 }
0x24b4   : > { %v2073_v51 = vpop.eup %2072 }
0x24b5   : > { %v1770_v52 = vadd.f32 1.0, %v2073_v51  ;;  %v1773_v53 = vmul.f32 -0.5, %v2073_v51  ;;  %v1776_v42 = vand.u32 2147483647, %v2073_v51 }
0x24b7   : > { %2074 = vlog2.f32 %v1770_v52  ;;  %v1774_v47 = vadd.f32 1.0, %v1773_v53  ;;  %vm1777_vm4 = vcmp.lt.f32.partialorder %v1776_v42, 0.0004427343 }
0x24b9   : > { %v1775_v56 = vmul.f32 %v2073_v51, %v1774_v47 }
0x24bd   : > { %v2075_v50 = vpop.eup %2074 }
0x24be   : > { %v1772_v55 = vmul.f32 0.6931472, %v2075_v50 }
0x24c0   : > { %v1778_v59 = vsel %vm1777_vm4, %v1775_v56, %v1772_v55 }
0x24c1   : > { %v1779_v60 = vadd.f32 %v1778_v59, %v1765_v58 }
0x24c3   : > { %v1780_v61 = vpack.c.bf16 %v1779_v60, %v1779_v60 }
0x24c5   : > { %1903 = vmatmul.msk.bf16.vlgmr.msrb.gmra.mxu3 %vm104_vm0, %v1780_v61 }
0x2548   : > { %v1793_v63 = vpop.f32.mrf.mxu3 }
0x2549   : > { %v1794_v0 = vadd.f32 %v2294_v13, %v1793_v63 }
0x254b   : > { %v1800_v3 = vadd.f32 %v1799_v2, %v1794_v0 }
0x254d   : > { %v1801_v5 = vmul.f32 %v1800_v3, %v2390_v16  ;;  %111 = sbr.rel (!%p109_p0) target bundleno = 28 (0x1c), region = 68 }
0x254f   : > { %v1802_v14 = vadd.f32 %v1801_v5, %v2706_v23  }
0x2550   : > { %v1795_v6 = vpop.f32.mrf.mxu3 }
0x2551   : > { %1805 = vst.msk [vmem:[%s1804_s26] sm:$0xff] %vm104_vm0, %v1802_v14 }
0x2552   :  { %1818 = dma.vmem_to_hbm [thread:$0]  %s1811_s2, 1024, %s1813_s7, [#allocation4], %s2217_s29, %s2217_s29, %s2218_s30  }
0x2553   :  { %2202 = dma.done.wait [#allocation4], 1024  }
0x2554   :  { %2203 = vsyncadd [#allocation4], 4294966272 }
0x2555   :  { %1823 = vsyncpa [#allocation3], 1 }
0x2556   :  { %1824 = vsyncpa [#allocation8], 1 }
0x2557   :  { %1825 = vsyncpa [#allocation4], 1 }
0x2558   :  { %1826 = vsyncpa [#allocation5], 1 }

</bundles_post_ra>
